<compile_context>
chip_gen: v5e
topology: v5e:2x2
jax: 0.10.0
libtpu: 0.0.40
codegen_flags: <defaults>
</compile_context>

<pallas_src>
import numpy as np
import jax
import jax.numpy as jnp
from jax import lax
from jax.experimental import pallas as pl
from jax.experimental.pallas import tpu as pltpu

# ---- model dims (small, consistent with the module) ----
B, L, D = 2, 8, 32          # batch, seq_len, d_model
H = 4                       # attention heads
DK = D // H
DFF = 64                    # d_ff = 2 * d_model here
MA_K = 5                    # series_decomp moving-average kernel (odd)
LN_EPS = 1e-5
N_LAYERS = 2


# ----------------------------------------------------------------------------
# Fused Pallas kernel: N_LAYERS EncoderLayers + my_Layernorm, one batch per grid step
# ----------------------------------------------------------------------------
def encoder_kernel(x_ref, dm_ref,
                   wqkv_ref, bqkv_ref, wo_ref, bo_ref, w1_ref, w2_ref,
                   g_ref, beta_ref,
                   out_ref, attn_ref):
    x = x_ref[0]                                   # (L, D)
    dm = dm_ref[...]                               # (L, L) = I - A_ma  (decomp matrix)
    scale = 1.0 / (DK ** 0.5)

    for layer in range(N_LAYERS):                  # static unroll; activations stay in VMEM/vregs
        # ---- fused Q/K/V projection: one (L, D) @ (D, 3D) matmul ----
        qkv = jnp.dot(x, wqkv_ref[layer],
                      preferred_element_type=jnp.float32) + bqkv_ref[layer]   # (L, 3D)
        q3 = jnp.stack([qkv[:, h * DK:(h + 1) * DK] for h in range(H)])       # (H, L, DK)
        k3 = jnp.stack([qkv[:, D + h * DK:D + (h + 1) * DK] for h in range(H)])
        v3 = jnp.stack([qkv[:, 2 * D + h * DK:2 * D + (h + 1) * DK] for h in range(H)])

        # ---- batched-over-heads attention ----
        s = lax.dot_general(q3, k3, (((2,), (2,)), ((0,), (0,))),
                            preferred_element_type=jnp.float32) * scale       # (H, L, L)
        s = s - jnp.max(s, axis=-1, keepdims=True)
        e = jnp.exp(s)
        a = e * pl.reciprocal(jnp.sum(e, axis=-1, keepdims=True), approx=True)

        # lane-denser attention writeback: one (L, H*L) store per layer
        attn_ref[0, layer] = jnp.concatenate([a[h] for h in range(H)], axis=-1)

        ctx = lax.dot_general(a, v3, (((2,), (1,)), ((0,), (0,))),
                              preferred_element_type=jnp.float32)             # (H, L, DK)
        ctx2 = jnp.concatenate([ctx[h] for h in range(H)], axis=-1)           # (L, D)
        new_x = jnp.dot(ctx2, wo_ref[layer],
                        preferred_element_type=jnp.float32) + bo_ref[layer]

        # ---- residual + series_decomp1 (dropout == identity in eval) ----
        x1 = x + new_x
        s1 = jnp.dot(dm, x1, preferred_element_type=jnp.float32)              # (I - A_ma) @ x1

        # ---- feed-forward (1x1 convs == matmuls, bias=False), relu ----
        y = jnp.maximum(jnp.dot(s1, w1_ref[layer],
                                preferred_element_type=jnp.float32), 0.0)
        y = jnp.dot(y, w2_ref[layer], preferred_element_type=jnp.float32)

        # ---- residual + series_decomp2 ----
        x = jnp.dot(dm, s1 + y, preferred_element_type=jnp.float32)

    # ---- my_Layernorm: LayerNorm then subtract per-sequence mean ----
    mean = jnp.mean(x, axis=-1, keepdims=True)
    var = jnp.mean(jnp.square(x - mean), axis=-1, keepdims=True)
    x_hat = (x - mean) * lax.rsqrt(var + LN_EPS) * g_ref[...] + beta_ref[...]
    out_ref[0] = x_hat - jnp.mean(x_hat, axis=0, keepdims=True)


# ----------------------------------------------------------------------------
# Wrapper (single pallas_call for the whole encoder)
# ----------------------------------------------------------------------------
def encoder_forward_pallas(x, dm, stacked, gamma, beta):
    wqkv, bqkv, wo, bo, w1, w2 = stacked
    out, attn_flat = pl.pallas_call(
        encoder_kernel,
        out_shape=(jax.ShapeDtypeStruct((B, L, D), jnp.float32),
                   jax.ShapeDtypeStruct((B, N_LAYERS, L, H * L), jnp.float32)),
        grid=(B,),
        in_specs=[
            pl.BlockSpec((1, L, D), lambda b: (b, 0, 0)),                 # x (per batch)
            pl.BlockSpec((L, L), lambda b: (0, 0)),                       # decomp matrix
            pl.BlockSpec((N_LAYERS, D, 3 * D), lambda b: (0, 0, 0)),      # Wqkv
            pl.BlockSpec((N_LAYERS, 1, 3 * D), lambda b: (0, 0, 0)),      # bqkv
            pl.BlockSpec((N_LAYERS, D, D), lambda b: (0, 0, 0)),          # Wo
            pl.BlockSpec((N_LAYERS, 1, D), lambda b: (0, 0, 0)),          # bo
            pl.BlockSpec((N_LAYERS, D, DFF), lambda b: (0, 0, 0)),        # W1
            pl.BlockSpec((N_LAYERS, DFF, D), lambda b: (0, 0, 0)),        # W2
            pl.BlockSpec((1, D), lambda b: (0, 0)),                       # gamma
            pl.BlockSpec((1, D), lambda b: (0, 0)),                       # beta
        ],
        out_specs=(pl.BlockSpec((1, L, D), lambda b: (b, 0, 0)),
                   pl.BlockSpec((1, N_LAYERS, L, H * L), lambda b: (b, 0, 0, 0))),
        compiler_params=pltpu.CompilerParams(
            dimension_semantics=("parallel",)),     # batch split across TCs on v7x
    )(x, dm, wqkv, bqkv, wo, bo, w1, w2, gamma, beta)

    # host-side relayout of the lane-packed attention slab -> list of (B, H, L, L)
    attn = attn_flat.reshape(B, N_LAYERS, L, H, L).transpose(0, 1, 3, 2, 4)
    attns = [attn[:, i] for i in range(N_LAYERS)]
    return out, attns


# ----------------------------------------------------------------------------
# Deterministic parameter setup + exact (I - moving-average) matrix
# ----------------------------------------------------------------------------
def make_decomp_matrix(seq_len, k):
    """DM = I - A_ma, where A_ma encodes replicate-pad + length-k AvgPool1d."""
    pad = (k - 1) // 2
    m = np.zeros((seq_len, seq_len), np.float32)
    for t in range(seq_len):
        for j in range(-pad, pad + 1):
            s = min(max(t + j, 0), seq_len - 1)
            m[t, s] += 1.0 / k
    return jnp.asarray(np.eye(seq_len, dtype=np.float32) - m)


def init_params(key):
    def nrm(k, shape, scale):
        return (scale * jax.random.normal(k, shape)).astype(jnp.float32)

    layers = []
    for i in range(N_LAYERS):
        ks = jax.random.split(jax.random.fold_in(key, i), 10)
        layers.append(dict(
            wq=nrm(ks[0], (D, D), D ** -0.5), bq=nrm(ks[1], (1, D), 0.02),
            wk=nrm(ks[2], (D, D), D ** -0.5), bk=nrm(ks[3], (1, D), 0.02),
            wv=nrm(ks[4], (D, D), D ** -0.5), bv=nrm(ks[5], (1, D), 0.02),
            wo=nrm(ks[6], (D, D), D ** -0.5), bo=nrm(ks[7], (1, D), 0.02),
            w1=nrm(ks[8], (D, DFF), D ** -0.5),
            w2=nrm(ks[9], (DFF, D), DFF ** -0.5),
        ))
    gamma = jnp.ones((1, D), jnp.float32)
    beta = jnp.zeros((1, D), jnp.float32)
    return layers, gamma, beta


def prepare_stacked_params(layer_params):
    """Stack per-layer weights (leading N_LAYERS dim) and fuse Q/K/V projections."""
    wqkv = jnp.stack([jnp.concatenate([p["wq"], p["wk"], p["wv"]], axis=1)
                      for p in layer_params])                   # (NL, D, 3D)
    bqkv = jnp.stack([jnp.concatenate([p["bq"], p["bk"], p["bv"]], axis=1)
                      for p in layer_params])                   # (NL, 1, 3D)
    wo = jnp.stack([p["wo"] for p in layer_params])
    bo = jnp.stack([p["bo"] for p in layer_params])
    w1 = jnp.stack([p["w1"] for p in layer_params])
    w2 = jnp.stack([p["w2"] for p in layer_params])
    return wqkv, bqkv, wo, bo, w1, w2


# ----------------------------------------------------------------------------
# Pure-JAX reference (mirrors the PyTorch forward) for a correctness check
# ----------------------------------------------------------------------------
def moving_avg_ref(x):
    pad = (MA_K - 1) // 2
    front = jnp.repeat(x[:, :1, :], pad, axis=1)
    end = jnp.repeat(x[:, -1:, :], pad, axis=1)
    xp = jnp.concatenate([front, x, end], axis=1)
    return jnp.mean(jnp.stack([xp[:, j:j + L, :] for j in range(MA_K)], 0), axis=0)


def encoder_layer_ref(x, p):
    q = (x @ p["wq"] + p["bq"]).reshape(B, L, H, DK)
    k = (x @ p["wk"] + p["bk"]).reshape(B, L, H, DK)
    v = (x @ p["wv"] + p["bv"]).reshape(B, L, H, DK)
    scores = jnp.einsum("blhe,bshe->bhls", q, k) / (DK ** 0.5)
    a = jax.nn.softmax(scores, axis=-1)
    ctx = jnp.einsum("bhls,bshd->blhd", a, v).reshape(B, L, D)
    new_x = ctx @ p["wo"] + p["bo"]
    x1 = x + new_x
    s1 = x1 - moving_avg_ref(x1)
    y = jax.nn.relu(s1 @ p["w1"]) @ p["w2"]
    x2 = s1 + y
    return x2 - moving_avg_ref(x2), a


def my_layernorm_ref(x, gamma, beta):
    mean = x.mean(-1, keepdims=True)
    var = ((x - mean) ** 2).mean(-1, keepdims=True)
    x_hat = (x - mean) / jnp.sqrt(var + LN_EPS) * gamma + beta
    return x_hat - x_hat.mean(1, keepdims=True)


# ----------------------------------------------------------------------------
if __name__ == "__main__":
    key = jax.random.PRNGKey(0)
    x = jax.random.normal(jax.random.fold_in(key, 123), (B, L, D), jnp.float32)
    layer_params, gamma, beta = init_params(key)
    dm = make_decomp_matrix(L, MA_K)
    stacked = prepare_stacked_params(layer_params)

    # TODO(synk): attn_mask handling not implemented (reference path uses attn_mask=None).
    out, attns = encoder_forward_pallas(x, dm, stacked, gamma, beta)
    out = jax.block_until_ready(out)
    for a in attns:
        jax.block_until_ready(a)

    # correctness check against pure-JAX reference
    xr = x
    ref_attns = []
    for p in layer_params:
        xr, ar = encoder_layer_ref(xr, p)
        ref_attns.append(ar)
    xr = my_layernorm_ref(xr, gamma, beta)

    assert out.shape == (B, L, D) and attns[0].shape == (B, H, L, L)
    assert jnp.allclose(out, xr, atol=1e-2, rtol=1e-2), float(jnp.max(jnp.abs(out - xr)))
    for a, ar in zip(attns, ref_attns):
        assert jnp.allclose(a, ar, atol=1e-2, rtol=1e-2), float(jnp.max(jnp.abs(a - ar)))

    print("KERNEL_OK")
</pallas_src>

<mosaic_0001>
module attributes {stable_mosaic.version = 11 : i64} {
  func.func @encoder_kernel(%arg0: i32, %arg1: memref<1x8x32xf32, #tpu.memory_space<vmem>>, %arg2: memref<8x8xf32, #tpu.memory_space<vmem>>, %arg3: memref<2x32x96xf32, #tpu.memory_space<vmem>>, %arg4: memref<2x1x96xf32, #tpu.memory_space<vmem>>, %arg5: memref<2x32x32xf32, #tpu.memory_space<vmem>>, %arg6: memref<2x1x32xf32, #tpu.memory_space<vmem>>, %arg7: memref<2x32x64xf32, #tpu.memory_space<vmem>>, %arg8: memref<2x64x32xf32, #tpu.memory_space<vmem>>, %arg9: memref<1x32xf32, #tpu.memory_space<vmem>>, %arg10: memref<1x32xf32, #tpu.memory_space<vmem>>, %arg11: memref<1x8x32xf32, #tpu.memory_space<vmem>>, %arg12: memref<1x2x8x32xf32, #tpu.memory_space<vmem>>) attributes {dimension_semantics = [#tpu.dimension_semantics<parallel>], iteration_bounds = array<i64: 2>, scalar_prefetch = 0 : i64, scratch_operands = 0 : i64, tpu.core_type = #tpu.core_type<tc>, window_params = [{transform_indices = @transform_0, window_bounds = array<i64: 1, 8, 32>}, {pipeline_mode = #tpu.pipeline_mode<synchronous>, transform_indices = @transform_1, window_bounds = array<i64: 8, 8>}, {pipeline_mode = #tpu.pipeline_mode<synchronous>, transform_indices = @transform_2, window_bounds = array<i64: 2, 32, 96>}, {pipeline_mode = #tpu.pipeline_mode<synchronous>, transform_indices = @transform_3, window_bounds = array<i64: 2, 1, 96>}, {pipeline_mode = #tpu.pipeline_mode<synchronous>, transform_indices = @transform_4, window_bounds = array<i64: 2, 32, 32>}, {pipeline_mode = #tpu.pipeline_mode<synchronous>, transform_indices = @transform_5, window_bounds = array<i64: 2, 1, 32>}, {pipeline_mode = #tpu.pipeline_mode<synchronous>, transform_indices = @transform_6, window_bounds = array<i64: 2, 32, 64>}, {pipeline_mode = #tpu.pipeline_mode<synchronous>, transform_indices = @transform_7, window_bounds = array<i64: 2, 64, 32>}, {pipeline_mode = #tpu.pipeline_mode<synchronous>, transform_indices = @transform_8, window_bounds = array<i64: 1, 32>}, {pipeline_mode = #tpu.pipeline_mode<synchronous>, transform_indices = @transform_9, window_bounds = array<i64: 1, 32>}, {transform_indices = @transform_10, window_bounds = array<i64: 1, 8, 32>}, {transform_indices = @transform_11, window_bounds = array<i64: 1, 2, 8, 32>}]} {
    %c0 = arith.constant 0 : index
    %c0_0 = arith.constant 0 : index
    %c0_1 = arith.constant 0 : index
    %0 = vector.load %arg1[%c0, %c0_0, %c0_1] : memref<1x8x32xf32, #tpu.memory_space<vmem>>, vector<1x8x32xf32>
    %1 = vector.shape_cast %0 : vector<1x8x32xf32> to vector<8x32xf32>
    %c0_2 = arith.constant 0 : index
    %c0_3 = arith.constant 0 : index
    %2 = vector.load %arg2[%c0_2, %c0_3] : memref<8x8xf32, #tpu.memory_space<vmem>>, vector<8x8xf32>
    %c0_4 = arith.constant 0 : index
    %c0_5 = arith.constant 0 : index
    %c0_6 = arith.constant 0 : index
    %3 = vector.load %arg3[%c0_4, %c0_5, %c0_6] : memref<2x32x96xf32, #tpu.memory_space<vmem>>, vector<1x32x96xf32>
    %4 = vector.shape_cast %3 : vector<1x32x96xf32> to vector<32x96xf32>
    %cst = arith.constant dense<0.000000e+00> : vector<8x96xf32>
    %5 = tpu.matmul %1, %4, %cst {dimension_numbers = #tpu.dot_dimension_numbers<[1], [0], [0], [1], [0, 0, 1, 1], [], []>} : vector<8x32xf32>, vector<32x96xf32>, vector<8x96xf32> -> vector<8x96xf32>
    %c0_7 = arith.constant 0 : index
    %c0_8 = arith.constant 0 : index
    %c0_9 = arith.constant 0 : index
    %6 = vector.load %arg4[%c0_7, %c0_8, %c0_9] : memref<2x1x96xf32, #tpu.memory_space<vmem>>, vector<1x1x96xf32>
    %7 = vector.shape_cast %6 : vector<1x1x96xf32> to vector<1x96xf32>
    %8 = vector.broadcast %7 : vector<1x96xf32> to vector<8x96xf32>
    %9 = arith.addf %5, %8 : vector<8x96xf32>
    %10 = vector.extract_strided_slice %9 {offsets = [0, 0], sizes = [8, 8], strides = [1, 1]} : vector<8x96xf32> to vector<8x8xf32>
    %11 = vector.extract_strided_slice %9 {offsets = [0, 8], sizes = [8, 8], strides = [1, 1]} : vector<8x96xf32> to vector<8x8xf32>
    %12 = vector.extract_strided_slice %9 {offsets = [0, 16], sizes = [8, 8], strides = [1, 1]} : vector<8x96xf32> to vector<8x8xf32>
    %13 = vector.extract_strided_slice %9 {offsets = [0, 24], sizes = [8, 8], strides = [1, 1]} : vector<8x96xf32> to vector<8x8xf32>
    %14 = vector.shape_cast %10 : vector<8x8xf32> to vector<1x8x8xf32>
    %15 = vector.shape_cast %11 : vector<8x8xf32> to vector<1x8x8xf32>
    %16 = vector.shape_cast %12 : vector<8x8xf32> to vector<1x8x8xf32>
    %17 = vector.shape_cast %13 : vector<8x8xf32> to vector<1x8x8xf32>
    %18 = tpu.concatenate %14, %15, %16, %17 in 0 : vector<1x8x8xf32>, vector<1x8x8xf32>, vector<1x8x8xf32>, vector<1x8x8xf32> -> vector<4x8x8xf32>
    %19 = vector.extract_strided_slice %9 {offsets = [0, 32], sizes = [8, 8], strides = [1, 1]} : vector<8x96xf32> to vector<8x8xf32>
    %20 = vector.extract_strided_slice %9 {offsets = [0, 40], sizes = [8, 8], strides = [1, 1]} : vector<8x96xf32> to vector<8x8xf32>
    %21 = vector.extract_strided_slice %9 {offsets = [0, 48], sizes = [8, 8], strides = [1, 1]} : vector<8x96xf32> to vector<8x8xf32>
    %22 = vector.extract_strided_slice %9 {offsets = [0, 56], sizes = [8, 8], strides = [1, 1]} : vector<8x96xf32> to vector<8x8xf32>
    %23 = vector.shape_cast %19 : vector<8x8xf32> to vector<1x8x8xf32>
    %24 = vector.shape_cast %20 : vector<8x8xf32> to vector<1x8x8xf32>
    %25 = vector.shape_cast %21 : vector<8x8xf32> to vector<1x8x8xf32>
    %26 = vector.shape_cast %22 : vector<8x8xf32> to vector<1x8x8xf32>
    %27 = tpu.concatenate %23, %24, %25, %26 in 0 : vector<1x8x8xf32>, vector<1x8x8xf32>, vector<1x8x8xf32>, vector<1x8x8xf32> -> vector<4x8x8xf32>
    %28 = vector.extract_strided_slice %9 {offsets = [0, 64], sizes = [8, 8], strides = [1, 1]} : vector<8x96xf32> to vector<8x8xf32>
    %29 = vector.extract_strided_slice %9 {offsets = [0, 72], sizes = [8, 8], strides = [1, 1]} : vector<8x96xf32> to vector<8x8xf32>
    %30 = vector.extract_strided_slice %9 {offsets = [0, 80], sizes = [8, 8], strides = [1, 1]} : vector<8x96xf32> to vector<8x8xf32>
    %31 = vector.extract_strided_slice %9 {offsets = [0, 88], sizes = [8, 8], strides = [1, 1]} : vector<8x96xf32> to vector<8x8xf32>
    %32 = vector.shape_cast %28 : vector<8x8xf32> to vector<1x8x8xf32>
    %33 = vector.shape_cast %29 : vector<8x8xf32> to vector<1x8x8xf32>
    %34 = vector.shape_cast %30 : vector<8x8xf32> to vector<1x8x8xf32>
    %35 = vector.shape_cast %31 : vector<8x8xf32> to vector<1x8x8xf32>
    %36 = tpu.concatenate %32, %33, %34, %35 in 0 : vector<1x8x8xf32>, vector<1x8x8xf32>, vector<1x8x8xf32>, vector<1x8x8xf32> -> vector<4x8x8xf32>
    %cst_10 = arith.constant dense<0.000000e+00> : vector<4x8x8xf32>
    %37 = tpu.matmul %18, %27, %cst_10 {dimension_numbers = #tpu.dot_dimension_numbers<[2], [2], [1], [1], [0, 0, 0, 1, 1, 1], [0], [0]>} : vector<4x8x8xf32>, vector<4x8x8xf32>, vector<4x8x8xf32> -> vector<4x8x8xf32>
    %cst_11 = arith.constant 0.353553385 : f32
    %38 = vector.broadcast %cst_11 : f32 to vector<4x8x8xf32>
    %39 = arith.mulf %37, %38 : vector<4x8x8xf32>
    %cst_12 = arith.constant dense<0xFF800000> : vector<4x8xf32>
    %40 = vector.multi_reduction <maximumf>, %39, %cst_12 [2] : vector<4x8x8xf32> to vector<4x8xf32>
    %41 = vector.shape_cast %40 : vector<4x8xf32> to vector<4x8x1xf32>
    %42 = vector.broadcast %41 : vector<4x8x1xf32> to vector<4x8x8xf32>
    %43 = arith.subf %39, %42 : vector<4x8x8xf32>
    %44 = math.exp %43 : vector<4x8x8xf32>
    %cst_13 = arith.constant dense<0.000000e+00> : vector<4x8xf32>
    %45 = vector.multi_reduction <add>, %44, %cst_13 [2] : vector<4x8x8xf32> to vector<4x8xf32>
    %46 = vector.shape_cast %45 : vector<4x8xf32> to vector<4x8x1xf32>
    %47 = tpu.reciprocal %46 {approx = true} : vector<4x8x1xf32> -> vector<4x8x1xf32>
    %48 = vector.broadcast %47 : vector<4x8x1xf32> to vector<4x8x8xf32>
    %49 = arith.mulf %44, %48 : vector<4x8x8xf32>
    %50 = vector.extract_strided_slice %49 {offsets = [0, 0, 0], sizes = [1, 8, 8], strides = [1, 1, 1]} : vector<4x8x8xf32> to vector<1x8x8xf32>
    %51 = vector.shape_cast %50 : vector<1x8x8xf32> to vector<8x8xf32>
    %52 = vector.extract_strided_slice %49 {offsets = [1, 0, 0], sizes = [1, 8, 8], strides = [1, 1, 1]} : vector<4x8x8xf32> to vector<1x8x8xf32>
    %53 = vector.shape_cast %52 : vector<1x8x8xf32> to vector<8x8xf32>
    %54 = vector.extract_strided_slice %49 {offsets = [2, 0, 0], sizes = [1, 8, 8], strides = [1, 1, 1]} : vector<4x8x8xf32> to vector<1x8x8xf32>
    %55 = vector.shape_cast %54 : vector<1x8x8xf32> to vector<8x8xf32>
    %56 = vector.extract_strided_slice %49 {offsets = [3, 0, 0], sizes = [1, 8, 8], strides = [1, 1, 1]} : vector<4x8x8xf32> to vector<1x8x8xf32>
    %57 = vector.shape_cast %56 : vector<1x8x8xf32> to vector<8x8xf32>
    %58 = tpu.concatenate %51, %53, %55, %57 in 1 : vector<8x8xf32>, vector<8x8xf32>, vector<8x8xf32>, vector<8x8xf32> -> vector<8x32xf32>
    %c0_14 = arith.constant 0 : index
    %c0_15 = arith.constant 0 : index
    %c0_16 = arith.constant 0 : index
    %c0_17 = arith.constant 0 : index
    %59 = vector.load %arg12[%c0_14, %c0_15, %c0_16, %c0_17] : memref<1x2x8x32xf32, #tpu.memory_space<vmem>>, vector<1x1x8x32xf32>
    %60 = vector.shape_cast %59 : vector<1x1x8x32xf32> to vector<8x32xf32>
    %61 = vector.shape_cast %58 : vector<8x32xf32> to vector<1x1x8x32xf32>
    tpu.vector_store %arg12[%c0_14, %c0_15, %c0_16, %c0_17], %61 {strides = array<i32>} : memref<1x2x8x32xf32, #tpu.memory_space<vmem>>, vector<1x1x8x32xf32>,
    %cst_18 = arith.constant dense<0.000000e+00> : vector<4x8x8xf32>
    %62 = tpu.matmul %49, %36, %cst_18 {dimension_numbers = #tpu.dot_dimension_numbers<[2], [1], [1], [2], [0, 0, 0, 1, 1, 2], [0], [0]>} : vector<4x8x8xf32>, vector<4x8x8xf32>, vector<4x8x8xf32> -> vector<4x8x8xf32>
    %63 = vector.extract_strided_slice %62 {offsets = [0, 0, 0], sizes = [1, 8, 8], strides = [1, 1, 1]} : vector<4x8x8xf32> to vector<1x8x8xf32>
    %64 = vector.shape_cast %63 : vector<1x8x8xf32> to vector<8x8xf32>
    %65 = vector.extract_strided_slice %62 {offsets = [1, 0, 0], sizes = [1, 8, 8], strides = [1, 1, 1]} : vector<4x8x8xf32> to vector<1x8x8xf32>
    %66 = vector.shape_cast %65 : vector<1x8x8xf32> to vector<8x8xf32>
    %67 = vector.extract_strided_slice %62 {offsets = [2, 0, 0], sizes = [1, 8, 8], strides = [1, 1, 1]} : vector<4x8x8xf32> to vector<1x8x8xf32>
    %68 = vector.shape_cast %67 : vector<1x8x8xf32> to vector<8x8xf32>
    %69 = vector.extract_strided_slice %62 {offsets = [3, 0, 0], sizes = [1, 8, 8], strides = [1, 1, 1]} : vector<4x8x8xf32> to vector<1x8x8xf32>
    %70 = vector.shape_cast %69 : vector<1x8x8xf32> to vector<8x8xf32>
    %71 = tpu.concatenate %64, %66, %68, %70 in 1 : vector<8x8xf32>, vector<8x8xf32>, vector<8x8xf32>, vector<8x8xf32> -> vector<8x32xf32>
    %c0_19 = arith.constant 0 : index
    %c0_20 = arith.constant 0 : index
    %c0_21 = arith.constant 0 : index
    %72 = vector.load %arg5[%c0_19, %c0_20, %c0_21] : memref<2x32x32xf32, #tpu.memory_space<vmem>>, vector<1x32x32xf32>
    %73 = vector.shape_cast %72 : vector<1x32x32xf32> to vector<32x32xf32>
    %cst_22 = arith.constant dense<0.000000e+00> : vector<8x32xf32>
    %74 = tpu.matmul %71, %73, %cst_22 {dimension_numbers = #tpu.dot_dimension_numbers<[1], [0], [0], [1], [0, 0, 1, 1], [], []>} : vector<8x32xf32>, vector<32x32xf32>, vector<8x32xf32> -> vector<8x32xf32>
    %c0_23 = arith.constant 0 : index
    %c0_24 = arith.constant 0 : index
    %c0_25 = arith.constant 0 : index
    %75 = vector.load %arg6[%c0_23, %c0_24, %c0_25] : memref<2x1x32xf32, #tpu.memory_space<vmem>>, vector<1x1x32xf32>
    %76 = vector.shape_cast %75 : vector<1x1x32xf32> to vector<1x32xf32>
    %77 = vector.broadcast %76 : vector<1x32xf32> to vector<8x32xf32>
    %78 = arith.addf %74, %77 : vector<8x32xf32>
    %79 = arith.addf %1, %78 : vector<8x32xf32>
    %cst_26 = arith.constant dense<0.000000e+00> : vector<8x32xf32>
    %80 = tpu.matmul %2, %79, %cst_26 {dimension_numbers = #tpu.dot_dimension_numbers<[1], [0], [0], [1], [0, 0, 1, 1], [], []>} : vector<8x8xf32>, vector<8x32xf32>, vector<8x32xf32> -> vector<8x32xf32>
    %c0_27 = arith.constant 0 : index
    %c0_28 = arith.constant 0 : index
    %c0_29 = arith.constant 0 : index
    %81 = vector.load %arg7[%c0_27, %c0_28, %c0_29] : memref<2x32x64xf32, #tpu.memory_space<vmem>>, vector<1x32x64xf32>
    %82 = vector.shape_cast %81 : vector<1x32x64xf32> to vector<32x64xf32>
    %cst_30 = arith.constant dense<0.000000e+00> : vector<8x64xf32>
    %83 = tpu.matmul %80, %82, %cst_30 {dimension_numbers = #tpu.dot_dimension_numbers<[1], [0], [0], [1], [0, 0, 1, 1], [], []>} : vector<8x32xf32>, vector<32x64xf32>, vector<8x64xf32> -> vector<8x64xf32>
    %cst_31 = arith.constant 0.000000e+00 : f32
    %84 = vector.broadcast %cst_31 : f32 to vector<8x64xf32>
    %85 = arith.maximumf %83, %84 : vector<8x64xf32>
    %c0_32 = arith.constant 0 : index
    %c0_33 = arith.constant 0 : index
    %c0_34 = arith.constant 0 : index
    %86 = vector.load %arg8[%c0_32, %c0_33, %c0_34] : memref<2x64x32xf32, #tpu.memory_space<vmem>>, vector<1x64x32xf32>
    %87 = vector.shape_cast %86 : vector<1x64x32xf32> to vector<64x32xf32>
    %cst_35 = arith.constant dense<0.000000e+00> : vector<8x32xf32>
    %88 = tpu.matmul %85, %87, %cst_35 {dimension_numbers = #tpu.dot_dimension_numbers<[1], [0], [0], [1], [0, 0, 1, 1], [], []>} : vector<8x64xf32>, vector<64x32xf32>, vector<8x32xf32> -> vector<8x32xf32>
    %89 = arith.addf %80, %88 : vector<8x32xf32>
    %cst_36 = arith.constant dense<0.000000e+00> : vector<8x32xf32>
    %90 = tpu.matmul %2, %89, %cst_36 {dimension_numbers = #tpu.dot_dimension_numbers<[1], [0], [0], [1], [0, 0, 1, 1], [], []>} : vector<8x8xf32>, vector<8x32xf32>, vector<8x32xf32> -> vector<8x32xf32>
    %c1 = arith.constant 1 : index
    %c0_37 = arith.constant 0 : index
    %c0_38 = arith.constant 0 : index
    %91 = vector.load %arg3[%c1, %c0_37, %c0_38] : memref<2x32x96xf32, #tpu.memory_space<vmem>>, vector<1x32x96xf32>
    %92 = vector.shape_cast %91 : vector<1x32x96xf32> to vector<32x96xf32>
    %cst_39 = arith.constant dense<0.000000e+00> : vector<8x96xf32>
    %93 = tpu.matmul %90, %92, %cst_39 {dimension_numbers = #tpu.dot_dimension_numbers<[1], [0], [0], [1], [0, 0, 1, 1], [], []>} : vector<8x32xf32>, vector<32x96xf32>, vector<8x96xf32> -> vector<8x96xf32>
    %c1_40 = arith.constant 1 : index
    %c0_41 = arith.constant 0 : index
    %c0_42 = arith.constant 0 : index
    %94 = vector.load %arg4[%c1_40, %c0_41, %c0_42] : memref<2x1x96xf32, #tpu.memory_space<vmem>>, vector<1x1x96xf32>
    %95 = vector.shape_cast %94 : vector<1x1x96xf32> to vector<1x96xf32>
    %96 = vector.broadcast %95 : vector<1x96xf32> to vector<8x96xf32>
    %97 = arith.addf %93, %96 : vector<8x96xf32>
    %98 = vector.extract_strided_slice %97 {offsets = [0, 0], sizes = [8, 8], strides = [1, 1]} : vector<8x96xf32> to vector<8x8xf32>
    %99 = vector.extract_strided_slice %97 {offsets = [0, 8], sizes = [8, 8], strides = [1, 1]} : vector<8x96xf32> to vector<8x8xf32>
    %100 = vector.extract_strided_slice %97 {offsets = [0, 16], sizes = [8, 8], strides = [1, 1]} : vector<8x96xf32> to vector<8x8xf32>
    %101 = vector.extract_strided_slice %97 {offsets = [0, 24], sizes = [8, 8], strides = [1, 1]} : vector<8x96xf32> to vector<8x8xf32>
    %102 = vector.shape_cast %98 : vector<8x8xf32> to vector<1x8x8xf32>
    %103 = vector.shape_cast %99 : vector<8x8xf32> to vector<1x8x8xf32>
    %104 = vector.shape_cast %100 : vector<8x8xf32> to vector<1x8x8xf32>
    %105 = vector.shape_cast %101 : vector<8x8xf32> to vector<1x8x8xf32>
    %106 = tpu.concatenate %102, %103, %104, %105 in 0 : vector<1x8x8xf32>, vector<1x8x8xf32>, vector<1x8x8xf32>, vector<1x8x8xf32> -> vector<4x8x8xf32>
    %107 = vector.extract_strided_slice %97 {offsets = [0, 32], sizes = [8, 8], strides = [1, 1]} : vector<8x96xf32> to vector<8x8xf32>
    %108 = vector.extract_strided_slice %97 {offsets = [0, 40], sizes = [8, 8], strides = [1, 1]} : vector<8x96xf32> to vector<8x8xf32>
    %109 = vector.extract_strided_slice %97 {offsets = [0, 48], sizes = [8, 8], strides = [1, 1]} : vector<8x96xf32> to vector<8x8xf32>
    %110 = vector.extract_strided_slice %97 {offsets = [0, 56], sizes = [8, 8], strides = [1, 1]} : vector<8x96xf32> to vector<8x8xf32>
    %111 = vector.shape_cast %107 : vector<8x8xf32> to vector<1x8x8xf32>
    %112 = vector.shape_cast %108 : vector<8x8xf32> to vector<1x8x8xf32>
    %113 = vector.shape_cast %109 : vector<8x8xf32> to vector<1x8x8xf32>
    %114 = vector.shape_cast %110 : vector<8x8xf32> to vector<1x8x8xf32>
    %115 = tpu.concatenate %111, %112, %113, %114 in 0 : vector<1x8x8xf32>, vector<1x8x8xf32>, vector<1x8x8xf32>, vector<1x8x8xf32> -> vector<4x8x8xf32>
    %116 = vector.extract_strided_slice %97 {offsets = [0, 64], sizes = [8, 8], strides = [1, 1]} : vector<8x96xf32> to vector<8x8xf32>
    %117 = vector.extract_strided_slice %97 {offsets = [0, 72], sizes = [8, 8], strides = [1, 1]} : vector<8x96xf32> to vector<8x8xf32>
    %118 = vector.extract_strided_slice %97 {offsets = [0, 80], sizes = [8, 8], strides = [1, 1]} : vector<8x96xf32> to vector<8x8xf32>
    %119 = vector.extract_strided_slice %97 {offsets = [0, 88], sizes = [8, 8], strides = [1, 1]} : vector<8x96xf32> to vector<8x8xf32>
    %120 = vector.shape_cast %116 : vector<8x8xf32> to vector<1x8x8xf32>
    %121 = vector.shape_cast %117 : vector<8x8xf32> to vector<1x8x8xf32>
    %122 = vector.shape_cast %118 : vector<8x8xf32> to vector<1x8x8xf32>
    %123 = vector.shape_cast %119 : vector<8x8xf32> to vector<1x8x8xf32>
    %124 = tpu.concatenate %120, %121, %122, %123 in 0 : vector<1x8x8xf32>, vector<1x8x8xf32>, vector<1x8x8xf32>, vector<1x8x8xf32> -> vector<4x8x8xf32>
    %cst_43 = arith.constant dense<0.000000e+00> : vector<4x8x8xf32>
    %125 = tpu.matmul %106, %115, %cst_43 {dimension_numbers = #tpu.dot_dimension_numbers<[2], [2], [1], [1], [0, 0, 0, 1, 1, 1], [0], [0]>} : vector<4x8x8xf32>, vector<4x8x8xf32>, vector<4x8x8xf32> -> vector<4x8x8xf32>
    %cst_44 = arith.constant 0.353553385 : f32
    %126 = vector.broadcast %cst_44 : f32 to vector<4x8x8xf32>
    %127 = arith.mulf %125, %126 : vector<4x8x8xf32>
    %cst_45 = arith.constant dense<0xFF800000> : vector<4x8xf32>
    %128 = vector.multi_reduction <maximumf>, %127, %cst_45 [2] : vector<4x8x8xf32> to vector<4x8xf32>
    %129 = vector.shape_cast %128 : vector<4x8xf32> to vector<4x8x1xf32>
    %130 = vector.broadcast %129 : vector<4x8x1xf32> to vector<4x8x8xf32>
    %131 = arith.subf %127, %130 : vector<4x8x8xf32>
    %132 = math.exp %131 : vector<4x8x8xf32>
    %cst_46 = arith.constant dense<0.000000e+00> : vector<4x8xf32>
    %133 = vector.multi_reduction <add>, %132, %cst_46 [2] : vector<4x8x8xf32> to vector<4x8xf32>
    %134 = vector.shape_cast %133 : vector<4x8xf32> to vector<4x8x1xf32>
    %135 = tpu.reciprocal %134 {approx = true} : vector<4x8x1xf32> -> vector<4x8x1xf32>
    %136 = vector.broadcast %135 : vector<4x8x1xf32> to vector<4x8x8xf32>
    %137 = arith.mulf %132, %136 : vector<4x8x8xf32>
    %138 = vector.extract_strided_slice %137 {offsets = [0, 0, 0], sizes = [1, 8, 8], strides = [1, 1, 1]} : vector<4x8x8xf32> to vector<1x8x8xf32>
    %139 = vector.shape_cast %138 : vector<1x8x8xf32> to vector<8x8xf32>
    %140 = vector.extract_strided_slice %137 {offsets = [1, 0, 0], sizes = [1, 8, 8], strides = [1, 1, 1]} : vector<4x8x8xf32> to vector<1x8x8xf32>
    %141 = vector.shape_cast %140 : vector<1x8x8xf32> to vector<8x8xf32>
    %142 = vector.extract_strided_slice %137 {offsets = [2, 0, 0], sizes = [1, 8, 8], strides = [1, 1, 1]} : vector<4x8x8xf32> to vector<1x8x8xf32>
    %143 = vector.shape_cast %142 : vector<1x8x8xf32> to vector<8x8xf32>
    %144 = vector.extract_strided_slice %137 {offsets = [3, 0, 0], sizes = [1, 8, 8], strides = [1, 1, 1]} : vector<4x8x8xf32> to vector<1x8x8xf32>
    %145 = vector.shape_cast %144 : vector<1x8x8xf32> to vector<8x8xf32>
    %146 = tpu.concatenate %139, %141, %143, %145 in 1 : vector<8x8xf32>, vector<8x8xf32>, vector<8x8xf32>, vector<8x8xf32> -> vector<8x32xf32>
    %c0_47 = arith.constant 0 : index
    %c1_48 = arith.constant 1 : index
    %c0_49 = arith.constant 0 : index
    %c0_50 = arith.constant 0 : index
    %147 = vector.load %arg12[%c0_47, %c1_48, %c0_49, %c0_50] : memref<1x2x8x32xf32, #tpu.memory_space<vmem>>, vector<1x1x8x32xf32>
    %148 = vector.shape_cast %147 : vector<1x1x8x32xf32> to vector<8x32xf32>
    %149 = vector.shape_cast %146 : vector<8x32xf32> to vector<1x1x8x32xf32>
    tpu.vector_store %arg12[%c0_47, %c1_48, %c0_49, %c0_50], %149 {strides = array<i32>} : memref<1x2x8x32xf32, #tpu.memory_space<vmem>>, vector<1x1x8x32xf32>,
    %cst_51 = arith.constant dense<0.000000e+00> : vector<4x8x8xf32>
    %150 = tpu.matmul %137, %124, %cst_51 {dimension_numbers = #tpu.dot_dimension_numbers<[2], [1], [1], [2], [0, 0, 0, 1, 1, 2], [0], [0]>} : vector<4x8x8xf32>, vector<4x8x8xf32>, vector<4x8x8xf32> -> vector<4x8x8xf32>
    %151 = vector.extract_strided_slice %150 {offsets = [0, 0, 0], sizes = [1, 8, 8], strides = [1, 1, 1]} : vector<4x8x8xf32> to vector<1x8x8xf32>
    %152 = vector.shape_cast %151 : vector<1x8x8xf32> to vector<8x8xf32>
    %153 = vector.extract_strided_slice %150 {offsets = [1, 0, 0], sizes = [1, 8, 8], strides = [1, 1, 1]} : vector<4x8x8xf32> to vector<1x8x8xf32>
    %154 = vector.shape_cast %153 : vector<1x8x8xf32> to vector<8x8xf32>
    %155 = vector.extract_strided_slice %150 {offsets = [2, 0, 0], sizes = [1, 8, 8], strides = [1, 1, 1]} : vector<4x8x8xf32> to vector<1x8x8xf32>
    %156 = vector.shape_cast %155 : vector<1x8x8xf32> to vector<8x8xf32>
    %157 = vector.extract_strided_slice %150 {offsets = [3, 0, 0], sizes = [1, 8, 8], strides = [1, 1, 1]} : vector<4x8x8xf32> to vector<1x8x8xf32>
    %158 = vector.shape_cast %157 : vector<1x8x8xf32> to vector<8x8xf32>
    %159 = tpu.concatenate %152, %154, %156, %158 in 1 : vector<8x8xf32>, vector<8x8xf32>, vector<8x8xf32>, vector<8x8xf32> -> vector<8x32xf32>
    %c1_52 = arith.constant 1 : index
    %c0_53 = arith.constant 0 : index
    %c0_54 = arith.constant 0 : index
    %160 = vector.load %arg5[%c1_52, %c0_53, %c0_54] : memref<2x32x32xf32, #tpu.memory_space<vmem>>, vector<1x32x32xf32>
    %161 = vector.shape_cast %160 : vector<1x32x32xf32> to vector<32x32xf32>
    %cst_55 = arith.constant dense<0.000000e+00> : vector<8x32xf32>
    %162 = tpu.matmul %159, %161, %cst_55 {dimension_numbers = #tpu.dot_dimension_numbers<[1], [0], [0], [1], [0, 0, 1, 1], [], []>} : vector<8x32xf32>, vector<32x32xf32>, vector<8x32xf32> -> vector<8x32xf32>
    %c1_56 = arith.constant 1 : index
    %c0_57 = arith.constant 0 : index
    %c0_58 = arith.constant 0 : index
    %163 = vector.load %arg6[%c1_56, %c0_57, %c0_58] : memref<2x1x32xf32, #tpu.memory_space<vmem>>, vector<1x1x32xf32>
    %164 = vector.shape_cast %163 : vector<1x1x32xf32> to vector<1x32xf32>
    %165 = vector.broadcast %164 : vector<1x32xf32> to vector<8x32xf32>
    %166 = arith.addf %162, %165 : vector<8x32xf32>
    %167 = arith.addf %90, %166 : vector<8x32xf32>
    %cst_59 = arith.constant dense<0.000000e+00> : vector<8x32xf32>
    %168 = tpu.matmul %2, %167, %cst_59 {dimension_numbers = #tpu.dot_dimension_numbers<[1], [0], [0], [1], [0, 0, 1, 1], [], []>} : vector<8x8xf32>, vector<8x32xf32>, vector<8x32xf32> -> vector<8x32xf32>
    %c1_60 = arith.constant 1 : index
    %c0_61 = arith.constant 0 : index
    %c0_62 = arith.constant 0 : index
    %169 = vector.load %arg7[%c1_60, %c0_61, %c0_62] : memref<2x32x64xf32, #tpu.memory_space<vmem>>, vector<1x32x64xf32>
    %170 = vector.shape_cast %169 : vector<1x32x64xf32> to vector<32x64xf32>
    %cst_63 = arith.constant dense<0.000000e+00> : vector<8x64xf32>
    %171 = tpu.matmul %168, %170, %cst_63 {dimension_numbers = #tpu.dot_dimension_numbers<[1], [0], [0], [1], [0, 0, 1, 1], [], []>} : vector<8x32xf32>, vector<32x64xf32>, vector<8x64xf32> -> vector<8x64xf32>
    %cst_64 = arith.constant 0.000000e+00 : f32
    %172 = vector.broadcast %cst_64 : f32 to vector<8x64xf32>
    %173 = arith.maximumf %171, %172 : vector<8x64xf32>
    %c1_65 = arith.constant 1 : index
    %c0_66 = arith.constant 0 : index
    %c0_67 = arith.constant 0 : index
    %174 = vector.load %arg8[%c1_65, %c0_66, %c0_67] : memref<2x64x32xf32, #tpu.memory_space<vmem>>, vector<1x64x32xf32>
    %175 = vector.shape_cast %174 : vector<1x64x32xf32> to vector<64x32xf32>
    %cst_68 = arith.constant dense<0.000000e+00> : vector<8x32xf32>
    %176 = tpu.matmul %173, %175, %cst_68 {dimension_numbers = #tpu.dot_dimension_numbers<[1], [0], [0], [1], [0, 0, 1, 1], [], []>} : vector<8x64xf32>, vector<64x32xf32>, vector<8x32xf32> -> vector<8x32xf32>
    %177 = arith.addf %168, %176 : vector<8x32xf32>
    %cst_69 = arith.constant dense<0.000000e+00> : vector<8x32xf32>
    %178 = tpu.matmul %2, %177, %cst_69 {dimension_numbers = #tpu.dot_dimension_numbers<[1], [0], [0], [1], [0, 0, 1, 1], [], []>} : vector<8x8xf32>, vector<8x32xf32>, vector<8x32xf32> -> vector<8x32xf32>
    %cst_70 = arith.constant dense<0.000000e+00> : vector<8xf32>
    %179 = vector.multi_reduction <add>, %178, %cst_70 [1] : vector<8x32xf32> to vector<8xf32>
    %180 = vector.shape_cast %179 : vector<8xf32> to vector<8x1xf32>
    %cst_71 = arith.constant 3.200000e+01 : f32
    %181 = vector.broadcast %cst_71 : f32 to vector<8x1xf32>
    %182 = arith.divf %180, %181 : vector<8x1xf32>
    %183 = vector.broadcast %182 : vector<8x1xf32> to vector<8x32xf32>
    %184 = arith.subf %178, %183 : vector<8x32xf32>
    %185 = arith.mulf %184, %184 : vector<8x32xf32>
    %cst_72 = arith.constant dense<0.000000e+00> : vector<8xf32>
    %186 = vector.multi_reduction <add>, %185, %cst_72 [1] : vector<8x32xf32> to vector<8xf32>
    %187 = vector.shape_cast %186 : vector<8xf32> to vector<8x1xf32>
    %cst_73 = arith.constant 3.200000e+01 : f32
    %188 = vector.broadcast %cst_73 : f32 to vector<8x1xf32>
    %189 = arith.divf %187, %188 : vector<8x1xf32>
    %190 = vector.broadcast %182 : vector<8x1xf32> to vector<8x32xf32>
    %191 = arith.subf %178, %190 : vector<8x32xf32>
    %cst_74 = arith.constant 9.99999974E-6 : f32
    %192 = vector.broadcast %cst_74 : f32 to vector<8x1xf32>
    %193 = arith.addf %189, %192 : vector<8x1xf32>
    %194 = math.rsqrt %193 : vector<8x1xf32>
    %195 = vector.broadcast %194 : vector<8x1xf32> to vector<8x32xf32>
    %196 = arith.mulf %191, %195 : vector<8x32xf32>
    %c0_75 = arith.constant 0 : index
    %c0_76 = arith.constant 0 : index
    %197 = vector.load %arg9[%c0_75, %c0_76] : memref<1x32xf32, #tpu.memory_space<vmem>>, vector<1x32xf32>
    %198 = vector.broadcast %197 : vector<1x32xf32> to vector<8x32xf32>
    %199 = arith.mulf %196, %198 : vector<8x32xf32>
    %c0_77 = arith.constant 0 : index
    %c0_78 = arith.constant 0 : index
    %200 = vector.load %arg10[%c0_77, %c0_78] : memref<1x32xf32, #tpu.memory_space<vmem>>, vector<1x32xf32>
    %201 = vector.broadcast %200 : vector<1x32xf32> to vector<8x32xf32>
    %202 = arith.addf %199, %201 : vector<8x32xf32>
    %cst_79 = arith.constant dense<0.000000e+00> : vector<32xf32>
    %203 = vector.multi_reduction <add>, %202, %cst_79 [0] : vector<8x32xf32> to vector<32xf32>
    %204 = vector.shape_cast %203 : vector<32xf32> to vector<1x32xf32>
    %cst_80 = arith.constant 8.000000e+00 : f32
    %205 = vector.broadcast %cst_80 : f32 to vector<1x32xf32>
    %206 = arith.divf %204, %205 : vector<1x32xf32>
    %207 = vector.broadcast %206 : vector<1x32xf32> to vector<8x32xf32>
    %208 = arith.subf %202, %207 : vector<8x32xf32>
    %c0_81 = arith.constant 0 : index
    %c0_82 = arith.constant 0 : index
    %c0_83 = arith.constant 0 : index
    %209 = vector.load %arg11[%c0_81, %c0_82, %c0_83] : memref<1x8x32xf32, #tpu.memory_space<vmem>>, vector<1x8x32xf32>
    %210 = vector.shape_cast %209 : vector<1x8x32xf32> to vector<8x32xf32>
    %211 = vector.shape_cast %208 : vector<8x32xf32> to vector<1x8x32xf32>
    tpu.vector_store %arg11[%c0_81, %c0_82, %c0_83], %211 {strides = array<i32>} : memref<1x8x32xf32, #tpu.memory_space<vmem>>, vector<1x8x32xf32>,
    return
  }
  func.func @transform_0(%arg0: i32) -> (i32, i32, i32) {
    %c0_i32 = arith.constant 0 : i32
    %c0_i32_0 = arith.constant 0 : i32
    %c0_i32_1 = arith.constant 0 : i32
    return %arg0, %c0_i32, %c0_i32_0 : i32, i32, i32
  }
  func.func @transform_1(%arg0: i32) -> (i32, i32) {
    %c0_i32 = arith.constant 0 : i32
    %c0_i32_0 = arith.constant 0 : i32
    %c0_i32_1 = arith.constant 0 : i32
    return %c0_i32, %c0_i32_0 : i32, i32
  }
  func.func @transform_2(%arg0: i32) -> (i32, i32, i32) {
    %c0_i32 = arith.constant 0 : i32
    %c0_i32_0 = arith.constant 0 : i32
    %c0_i32_1 = arith.constant 0 : i32
    %c0_i32_2 = arith.constant 0 : i32
    return %c0_i32, %c0_i32_0, %c0_i32_1 : i32, i32, i32
  }
  func.func @transform_3(%arg0: i32) -> (i32, i32, i32) {
    %c0_i32 = arith.constant 0 : i32
    %c0_i32_0 = arith.constant 0 : i32
    %c0_i32_1 = arith.constant 0 : i32
    %c0_i32_2 = arith.constant 0 : i32
    return %c0_i32, %c0_i32_0, %c0_i32_1 : i32, i32, i32
  }
  func.func @transform_4(%arg0: i32) -> (i32, i32, i32) {
    %c0_i32 = arith.constant 0 : i32
    %c0_i32_0 = arith.constant 0 : i32
    %c0_i32_1 = arith.constant 0 : i32
    %c0_i32_2 = arith.constant 0 : i32
    return %c0_i32, %c0_i32_0, %c0_i32_1 : i32, i32, i32
  }
  func.func @transform_5(%arg0: i32) -> (i32, i32, i32) {
    %c0_i32 = arith.constant 0 : i32
    %c0_i32_0 = arith.constant 0 : i32
    %c0_i32_1 = arith.constant 0 : i32
    %c0_i32_2 = arith.constant 0 : i32
    return %c0_i32, %c0_i32_0, %c0_i32_1 : i32, i32, i32
  }
  func.func @transform_6(%arg0: i32) -> (i32, i32, i32) {
    %c0_i32 = arith.constant 0 : i32
    %c0_i32_0 = arith.constant 0 : i32
    %c0_i32_1 = arith.constant 0 : i32
    %c0_i32_2 = arith.constant 0 : i32
    return %c0_i32, %c0_i32_0, %c0_i32_1 : i32, i32, i32
  }
  func.func @transform_7(%arg0: i32) -> (i32, i32, i32) {
    %c0_i32 = arith.constant 0 : i32
    %c0_i32_0 = arith.constant 0 : i32
    %c0_i32_1 = arith.constant 0 : i32
    %c0_i32_2 = arith.constant 0 : i32
    return %c0_i32, %c0_i32_0, %c0_i32_1 : i32, i32, i32
  }
  func.func @transform_8(%arg0: i32) -> (i32, i32) {
    %c0_i32 = arith.constant 0 : i32
    %c0_i32_0 = arith.constant 0 : i32
    %c0_i32_1 = arith.constant 0 : i32
    return %c0_i32, %c0_i32_0 : i32, i32
  }
  func.func @transform_9(%arg0: i32) -> (i32, i32) {
    %c0_i32 = arith.constant 0 : i32
    %c0_i32_0 = arith.constant 0 : i32
    %c0_i32_1 = arith.constant 0 : i32
    return %c0_i32, %c0_i32_0 : i32, i32
  }
  func.func @transform_10(%arg0: i32) -> (i32, i32, i32) {
    %c0_i32 = arith.constant 0 : i32
    %c0_i32_0 = arith.constant 0 : i32
    %c0_i32_1 = arith.constant 0 : i32
    return %arg0, %c0_i32, %c0_i32_0 : i32, i32, i32
  }
  func.func @transform_11(%arg0: i32) -> (i32, i32, i32, i32) {
    %c0_i32 = arith.constant 0 : i32
    %c0_i32_0 = arith.constant 0 : i32
    %c0_i32_1 = arith.constant 0 : i32
    %c0_i32_2 = arith.constant 0 : i32
    return %arg0, %c0_i32, %c0_i32_0, %c0_i32_1 : i32, i32, i32, i32
  }
}

</mosaic_0001>

<bundles_post_ra>
// kernel: tpu_custom_call.1
= control target key start
LH: loop header
LB: loop body
LE: loop exit
PB: predicated region body
PF: predicated region fallthrough
CT: control target
= control target key end

     0   :  { %s2530_s0 = inlined_call_operand.hbm [shape: f32[2,8,32], index: 0, kind: input, shape index: {}]   ;;  %s2531_s1 = inlined_call_operand.hbm [shape: f32[8,8], index: 1, kind: input, shape index: {}]   ;;  %s2532_s2 = inlined_call_operand.vmem [shape: f32[2,32,96], index: 2, kind: input, shape index: {}]   ;;  %s2533_s3 = inlined_call_operand.vmem [shape: f32[2,1,96], index: 3, kind: input, shape index: {}]   ;;  %s2534_s4 = inlined_call_operand.vmem [shape: f32[2,32,32], index: 4, kind: input, shape index: {}]   ;;  %s2535_s5 = inlined_call_operand.hbm [shape: f32[2,1,32], index: 5, kind: input, shape index: {}]   ;;  %s2536_s6 = inlined_call_operand.vmem [shape: f32[2,32,64], index: 6, kind: input, shape index: {}]   ;;  %s2537_s7 = inlined_call_operand.vmem [shape: f32[2,64,32], index: 7, kind: input, shape index: {}]   ;;  %s2538_s8 = inlined_call_operand.vmem [shape: f32[1,32], index: 8, kind: input, shape index: {}]   ;;  %s2539_s9 = inlined_call_operand.vmem [shape: f32[1,32], index: 9, kind: input, shape index: {}]   ;;  %s2540_s10 = inlined_call_operand.hbm [shape: f32[2,8,32], index: 10, kind: output, shape index: {0}]   ;;  %s2541_s11 = inlined_call_operand.hbm [shape: f32[2,2,8,32], index: 11, kind: output, shape index: {1}]  }
   0x1   :  { %2554 = sst [smem:[#allocation18_spill]] %s2530_s0 }
   0x2   :  { %2555 = sst [smem:[#allocation19_spill]] %s2531_s1 }
   0x3   :  { %2556 = sst [smem:[#allocation20_spill]] %s2535_s5 }
   0x4   :  { %17 = vsyncpa [#allocation3], 0 }
   0x5   :  { %19 = vsyncpa [#allocation3 + $0x1], 0 }
   0x6   :  { %20 = vsyncpa [#allocation6], 0 }
   0x7   :  { %21 = vsyncpa [#allocation4], 0 }
   0x8   :  { %23 = vsyncpa [#allocation4 + $0x1], 0 }
   0x9   :  { %24 = vsyncpa [#allocation10], 0 }
   0xa   :  { %26 = vsyncpa [#allocation10 + $0x1], 0  ;;  %s2074_s17 = smov 0   ;;  %s2076_s18 = smov 0  }
   0xb   :  { %s2078_s19 = smov 0   ;;  %s2080_s20 = smov 0  }
   0xc LB: > { %2557 = sst [smem:[#allocation15_spill]] %s1993_s19  ;;  %s2095_s21 = sadd.s32 4294967295, %s1997_s20   ;;  %s1997_s20 = sphi %s2080_s20, %s2574_s20   ;;  %s1993_s19 = sphi %s2078_s19, %s2576_s19   ;;  %s1989_s18 = sphi %s2076_s18, %s2578_s18   ;;  %s1985_s17 = sphi %s2074_s17, %s2577_s17  }
   0xd   : > { %s1587_s22 = sadd.s32 4294967294, %s1997_s20   ;;  %p52_p0 = scmp.ne.s32.totalorder %s1989_s18, %s1985_s17 }
   0xe   : > { %p53_p1 = scmp.eq.s32.totalorder %s2095_s21, 0  ;;  %p265_p2 = scmp.eq.s32.totalorder %s2095_s21, 1 }
   0xf   : > { %p271_p3 = scmp.eq.s32.totalorder %s1587_s22, 1  ;;  %p1588_p5 = scmp.ge.s32.totalorder %s1997_s20, 1 }
  0x10   : > { %p2104_p4 = por %p53_p1, %p52_p0  ;;  %p304_p7 = scmp.lt.s32.totalorder %s1997_s20, 3 }
  0x11   : > { %p2109_p6 = por %p271_p3, %p52_p0  ;;  %s2560_s1 = sld [smem:[#allocation19_spill]] }
  0x12   : > { %p2117_p8 = pnand %p1588_p5, %p304_p7  ;;  %s1999_s29 = smov [#allocation5]  }
  0x13   : > { %s318_s30 = sshll.u32 %s1999_s29, 4  ;;  %s2562_s5 = sld [smem:[#allocation20_spill]]  ;;  %s319_s30 = int_to_ptr.vmem [resolvable:$true] %s318_s30 }
  0x14   : > { %p1680_p10 = pneg %p2117_p8  ;;  %s2000_s15 = smov [#allocation7]  }
  0x15   : > { %s338_s16 = sshll.u32 %s2000_s15, 4  ;;  %s2001_s22 = smov 16   ;;  %s339_s16 = int_to_ptr.vmem [resolvable:$true] %s338_s16 }
  0x16   : > { %p1681_p11 = pnand %p1680_p10, %p53_p1  ;;  %s2002_s25 = smov 1  }
  0x17   : > { %s316_s27 = sshll.u32 %s2560_s1, 4  ;;  %s2130_s26 = sadd.s32 1, %s1997_s20   ;;  %s317_s27 = int_to_ptr.hbm [resolvable:$true] %s316_s27 }
  0x18   : > { %1683 = dma.hbm_to_vmem [thread:$0]  (!%p1681_p11), %s317_s27, 128, %s319_s30, [#allocation6]  }
  0x19   : > { %s336_s14 = sshll.u32 %s2562_s5, 4  ;;  %2563 = sst [smem:[#allocation16_spill]] %s2130_s26  ;;  %s337_s14 = int_to_ptr.hbm [resolvable:$true] %s336_s14 }
  0x1a   : > { %1686 = dma.hbm_to_vmem [thread:$0]  (!%p1681_p11), %s337_s14, 32, %s339_s16, [#allocation6], %s2001_s22, %s2001_s22, %s2002_s25  }
  0x1b   : > { %s36_s29 = ssub.s32 %s1997_s20, %s2130_s26  ;;  %s39_s12 = sadd.s32 1, %s1993_s19 }
  0x1c   : > { %p37_p12 = scmp.eq.s32.totalorder %s36_s29, 0  ;;  %p46_p13 = scmp.ne.s32.totalorder %s1993_s19, %s1989_s18 }
  0x1d   : > { %p47_p0 = scmp.eq.s32.totalorder %s1997_s20, 0  ;;  %p1700_p7 = scmp.lt.s32.totalorder %s1997_s20, 2 }
  0x1e   : > { %s2139_s13 = scalar_select %p37_p12, %s1993_s19, %s39_s12  }
  0x1f   : > { %p48_p3 = por %p47_p0, %p46_p13  ;;  %p2143_p5 = por %p265_p2, %p46_p13 }
  0x20   : > { %2564 = sst [smem:[#allocation17_spill]] %s2139_s13  ;;  %s364_s27 = sand.u32 1, %s1993_s19  }
  0x21   : > { %s1592_s30 = sshll.u32 %s364_s27, 3  ;;  %s1593_s14 = sshll.u32 %s1997_s20, 3 }
  0x22   : > { %s2566_s0 = sld [smem:[#allocation18_spill]]  ;;  %s368_s29 = scalar_lea.vmem [#allocation2], %s1592_s30 }
  0x23   : > { %s376_s1 = sshll.u32 %s368_s29, 4  ;;  %p2153_p10 = pnand %p1700_p7, %p48_p3  ;;  %s377_s1 = int_to_ptr.vmem [resolvable:$true] %s376_s1 }
  0x24   : > { %s365_s13 = scalar_lea.sflag [#allocation3], %s364_s27 }
  0x25   : > { %p1869_p11 = pneg %p2153_p10 }
  0x28   : > { %s372_s25 = scalar_lea.hbm %s2566_s0, %s1593_s14  ;;  %s1872_s16 = scalar_lea.hbm %s2566_s0, 16 }
  0x29   : > { %s374_s5 = sshll.u32 %s372_s25, 4  ;;  %s375_s5 = int_to_ptr.hbm [resolvable:$true] %s374_s5 }
  0x2a   : > { %s1865_s26 = sshra.s32 %s375_s5, 4  ;;  %s1866_s26 = int_to_ptr.hbm [resolvable:$true] %s1865_s26 }
  0x2b   : > { %s1867_s19 = scalar_lea.hbm %s1866_s26, 8  ;;  %p1873_p0 = scmp.lt.s32.totalorder %s1866_s26, %s2566_s0 }
  0x2c   : > { %p1868_p2 = scmp.ne.s32.totalorder %s1866_s26, %s1867_s19  ;;  %p1874_p3 = scmp.lt.s32.totalorder %s1872_s16, %s1867_s19 }
  0x2e   : > { %p1870_p12 = pnand %p1869_p11, %p1868_p2  ;;  %p1875_p7 = por %p1874_p3, %p1873_p0 }
  0x30   : > { %p1871_p13 = pneg %p1870_p12 }
  0x32   : > { %p1876_p9 = pnand %p1875_p7, %p1871_p13 }
  0x34   : > { %1879 = shalt.err (!%p1876_p9)
}
  0x35   : > { %1690 = dma.hbm_to_vmem [thread:$0]  (!%p2153_p10), %s375_s5, 128, %s377_s1, %s365_s13  }
  0x36   : > { %385 = sbr.rel (%p2117_p8) target bundleno = 3705 (0xe79), region = 60  ;;  %s2170_s27 = sand.u32 (!%p2117_p8), 1, %s1989_s18  }
  0x37   : > { %s2545_s29 = sshll.u32 (!%p2117_p8), %s2170_s27, 3  ;;  %s388_s14 = scalar_lea.sflag (!%p2117_p8), [#allocation3], %s2170_s27 }
  0x38   : > { %s391_s19 = scalar_lea.vmem (!%p2117_p8), [#allocation2], %s2545_s29 }
  0x3b   : > { %1968 = dma.done.wait (%p2104_p4), %s388_s14, 128  }
  0x3c   : > { %1970 = vsyncadd (%p2104_p4), %s388_s14, 4294967168 }
  0x3d   : > { %1972 = dma.done.wait (%p53_p1), [#allocation6], 160  }
  0x3e   : > { %1974 = vsyncadd (%p53_p1), [#allocation6], 4294967136  ;;  %v451_v0 = vld [vmem:[%s2532_s2 + $0x18] sm:$0xff]  ;;  %v450_v1 = vld [vmem:[%s2532_s2 + $0x10] sm:$0xff]  ;;  %vm456_vm0 = vcmask 261120   ;;  %s2003_s25 = smov 104  }
  0x3f   : > { %472 = vmatpush.msra.mxu0 %v451_v0  ;;  %v449_v2 = vld [vmem:[%s2532_s2 + $0x8] sm:$0xff]  ;;  %v448_v3 = vld [vmem:[%s2532_s2] sm:$0xff]  ;;  %s2004_s14 = smov 120   ;;  %s2005_s1 = smov 96   ;;  %vm489_vm1 = vcmask 64512   ;;  %vm653_vm2 = vcmask 130048  }
  0x40   : > { %v2196_v4 = vld [vmem:[%s391_s19] sm:$0xff]  ;;  %s2006_s19 = smov 112   ;;  %s2552_s5 = smov 64   ;;  %vm655_vm3 = vcmask 195584   ;;  %vm865_vm4 = vcmask 523264  }
  0x41   : > { %473 = vmatpush.msra.mxu0 %v450_v1  ;;  %v1761_v5 = vld [vmem:[%s2533_s3] ss:$0 sm:$0xff]  ;;  %s2546_s28 = smov 16   ;;  %s2548_s26 = smov 8  }
  0x42   : > { %s2550_s13 = smov 24   ;;  %s1433_s12 = scalar_lea.sflag [#allocation10], %s2170_s27 }
  0x43   : > { %474 = vmatpush.msra.mxu0 %v449_v2 }
  0x45   : > { %475 = vmatpush.msra.mxu0 %v448_v3 }
  0x46   : > { %1600 = vmatmul.msk.f32.vlgmr.msra.gmra.mxu0 %vm456_vm0, %v2196_v4 }
  0xc3   : > { %v477_v6 = vpop.f32.mrf.mxu0 }
  0xc4   : > { %v478_v7 = vadd.f32 %v1761_v5, %v477_v6  ;;  %v777_v6 = vld [vmem:[%s2534_s4 + $0x18] sm:$0xff] }
  0xc6   : > { %485 = vrot.lane.b32.xlu1 %v478_v7, %s2003_s25  ;;  %481 = vrot.lane.b32.xlu0 %v478_v7, %s2004_s14 }
  0xce   : > { %487 = vrot.lane.b32.xlu1 %v478_v7, %s2005_s1  ;;  %483 = vrot.lane.b32.xlu0 %v478_v7, %s2006_s19 }
 0x138   : > { %v2207_v8 = vpop.permute.xlu1 %485  ;;  %v482_v9 = vpop.permute.xlu0 %481 }
 0x139   : > { %566 = vrot.lane.b32.xlu0 %v2207_v8, %s2005_s1  ;;  %514 = vrot.lane.b32.xlu2 %v482_v9, %s2005_s1  ;;  %v1751_v32 = vpack.i.bf16 %v482_v9, %v478_v7 }
 0x140   : > { %v488_v10 = vpop.permute.xlu1 %487  ;;  %v484_v11 = vpop.permute.xlu0 %483 }
 0x141   : > { %1601 = vmatpush.xpose.msk.msra.mxu1 %vm489_vm1, %v488_v10  ;;  %540 = vrot.lane.b32.xlu2 %v484_v11, %s2005_s1 }
 0x144   : > { %1602 = vmatmul.msk.f32.vlgmr.msra.gmra.mxu1 %vm489_vm1, %v478_v7  ;;  %v776_v7 = vld [vmem:[%s2534_s4 + $0x10] sm:$0xff] }
 0x193   : > { %v515_v12 = vpop.permute.xlu2 %514 }
 0x194   : > { %1603 = vmatpush.xpose.msk.msra.mxu2 %vm489_vm1, %v515_v12 }
 0x197   : > { %1604 = vmatmul.msk.f32.vlgmr.msra.gmra.mxu2 %vm489_vm1, %v482_v9  ;;  %v774_v9 = vld [vmem:[%s2534_s4] sm:$0xff] }
 0x19b   : > { %v541_v13 = vpop.permute.xlu2 %540 }
 0x19c   : > { %1605 = vmatpush.xpose.msk.msra.mxu3 %vm489_vm1, %v541_v13 }
 0x19f   : > { %1606 = vmatmul.msk.f32.vlgmr.msra.gmra.mxu3 %vm489_vm1, %v484_v11 }
 0x1ab   : > { %v567_v14 = vpop.permute.xlu0 %566 }
 0x1ac   : > { %1607 = vmatpush.xpose.msk.msrb.mxu1 %vm489_vm1, %v567_v14 }
 0x1af   : > { %1608 = vmatmul.msk.f32.vlgmr.msrb.gmra.mxu1 %vm489_vm1, %v2207_v8 }
 0x1c1   : > { %v511_v15 = vpop.f32.mrf.mxu1 }
 0x1c2   : > { %v592_v16 = vmul.f32 0.35355338, %v511_v15 }
 0x1c4   : > { %v596_v17 = vsel %vm489_vm1, %v592_v16, -inf }
 0x1c5   : > { %597 = vmax.xlane.f32.xlu1 %v596_v17  ;;  %v831_v17 = vld [vmem:[%s2536_s6 + $0x10] sm:$0xff] }
 0x21a   : > { %v537_v18 = vpop.f32.mrf.mxu2 }
 0x21b   : > { %v593_v19 = vmul.f32 0.35355338, %v537_v18  ;;  %v830_v18 = vld [vmem:[%s2536_s6 + $0x8] sm:$0xff] }
 0x21d   : > { %v599_v20 = vsel %vm489_vm1, %v593_v19, -inf }
 0x21e   : > { %600 = vmax.xlane.f32.xlu2 %v599_v20 }
 0x222   : > { %v563_v21 = vpop.f32.mrf.mxu3 }
 0x223   : > { %v594_v22 = vmul.f32 0.35355338, %v563_v21 }
 0x225   : > { %v602_v23 = vsel %vm489_vm1, %v594_v22, -inf }
 0x226   : > { %603 = vmax.xlane.f32.xlu0 %v602_v23  ;;  %v2279_v23 = vld [vmem:[#allocation5] sm:$0xff] }
 0x22c   : > { %v589_v24 = vpop.f32.mrf.mxu1 }
 0x22d   : > { %v595_v25 = vmul.f32 0.35355338, %v589_v24  ;;  %v829_v24 = vld [vmem:[%s2536_s6] sm:$0xff] }
 0x22f   : > { %v605_v26 = vsel %vm489_vm1, %v595_v25, -inf }
 0x230   : > { %606 = vmax.xlane.f32.xlu2 %v605_v26  ;;  %v863_v26 = vld [vmem:[%s2537_s7 + $0x30] sm:$0xff] }
 0x238   : > { %v598_v27 = vpop.xlane.xlu1 %597 }
 0x239   : > { %v608_v28 = vsub.f32 %v592_v16, %v598_v27  ;;  %v832_v16 = vld [vmem:[%s2536_s6 + $0x18] sm:$0xff]  ;;  %v861_v27 = vld [vmem:[%s2537_s7 + $0x20] sm:$0xff] }
 0x23a   : > { %848 = vmatpush.msrb.mxu0 %v832_v16 }
 0x23b   : > { %v612_v29 = vmul.f32 1.442695, %v608_v28  ;;  %v860_v28 = vld [vmem:[%s2537_s7 + $0x18] sm:$0xff] }
 0x23c   : > { %849 = vmatpush.msrb.mxu0 %v831_v17 }
 0x23d   : > { %1767 = vpow2.f32 %v612_v29  ;;  %v859_v29 = vld [vmem:[%s2537_s7 + $0x10] sm:$0xff] }
 0x23e   : > { %850 = vmatpush.msrb.mxu0 %v830_v18 }
 0x240   : > { %851 = vmatpush.msrb.mxu0 %v829_v24 }
 0x243   : > { %v1768_v30 = vpop.eup %1767 }
 0x244   : > { %v620_v31 = vsel %vm489_vm1, %v1768_v30, 0.0 }
 0x245   : > { %621 = vadd.xlane.f32.xlu1 %v620_v31  ;;  %v858_v31 = vld [vmem:[%s2537_s7 + $0x8] sm:$0xff] }
 0x25e   : > { %1752 = vrot.lane.b32.xlu1 %v1751_v32, %s2552_s5  ;;  %v857_v32 = vld [vmem:[%s2537_s7] sm:$0xff] }
 0x291   : > { %v601_v35 = vpop.xlane.xlu2 %600 }
 0x292   : > { %v609_v41 = vsub.f32 %v593_v19, %v601_v35  ;;  %v1762_v19 = vld [vmem:[#allocation7] ss:$0 sm:$0xff] }
 0x293   : > { %v1621_v35 = vld [vmem:[%s2532_s2 + $0x38] sm:$0xff] }
 0x294   : > { %v614_v43 = vmul.f32 1.442695, %v609_v41 }
 0x299   : > { %v604_v33 = vpop.xlane.xlu0 %603 }
 0x29a   : > { %v610_v34 = vsub.f32 %v594_v22, %v604_v33 }
 0x29c   : > { %v616_v36 = vmul.f32 1.442695, %v610_v34 }
 0x29e   : > { %1769 = vpow2.f32 %v616_v36  ;;  %v1620_v36 = vld [vmem:[%s2532_s2 + $0x30] sm:$0xff] }
 0x2a3   : > { %v607_v37 = vpop.xlane.xlu2 %606 }
 0x2a4   : > { %v1770_v38 = vpop.eup %1769  ;;  %v611_v39 = vsub.f32 %v595_v25, %v607_v37  ;;  %v864_v25 = vld [vmem:[%s2537_s7 + $0x38] sm:$0xff]  ;;  %v1619_v37 = vld [vmem:[%s2532_s2 + $0x28] sm:$0xff] }
 0x2a5   : > { %v626_v40 = vsel %vm489_vm1, %v1770_v38, 0.0 }
 0x2a6   : > { %v618_v42 = vmul.f32 1.442695, %v611_v39  ;;  %627 = vadd.xlane.f32.xlu0 %v626_v40  ;;  %v1618_v40 = vld [vmem:[%s2532_s2 + $0x20] sm:$0xff] }
 0x2a8   : > { %1771 = vpow2.f32 %v618_v42  ;;  %v1763_v42 = vld [vmem:[%s2533_s3 + $0x1] ss:$0 sm:$0xff] }
 0x2a9   : > { %1773 = vpow2.f32 %v614_v43 }
 0x2ae   : > { %v1772_v44 = vpop.eup %1771 }
 0x2af   : > { %v629_v45 = vsel %vm489_vm1, %v1772_v44, 0.0  ;;  %v1774_v46 = vpop.eup %1773 }
 0x2b0   : > { %630 = vadd.xlane.f32.xlu2 %v629_v45  ;;  %v623_v47 = vsel %vm489_vm1, %v1774_v46, 0.0 }
 0x2b8   : > { %624 = vadd.xlane.f32.xlu2 %v623_v47  ;;  %v622_v48 = vpop.xlane.xlu1 %621 }
 0x2b9   : > { %1775 = vrcp.f32 %v622_v48 }
 0x2ba   : > { %709 = vrot.lane.b32.xlu0 %v484_v11, %s2552_s5 }
 0x2bf   : > { %v1776_v49 = vpop.eup %1775 }
 0x2c0   : > { %v2234_v53 = vmul.f32 %v1776_v49, %v1768_v30 }
 0x2d0   : > { %v1753_v50 = vpop.permute.xlu1 %1752  ;;  %734 = vrot.lane.b32.xlu2 %v2207_v8, %s2552_s5  ;;  %v775_v8 = vld [vmem:[%s2534_s4 + $0x8] sm:$0xff]  ;;  %s1599_s5 = sshll.u32 %s2170_s27, 4 }
 0x2d1   : > { %v1754_v51 = vunpack.i.l.bf16 %v1753_v50  ;;  %v1755_v52 = vunpack.i.h.bf16 %v1753_v50 }
 0x2d3   : > { %679 = vmatpush.msrb.mxu2 %v1754_v51  ;;  %704 = vmatpush.msrb.mxu3 %v1755_v52 }
 0x2d4   : > { %1609 = vmatmul.msk.f32.vlgmr.msrb.gmra.mxu2 %vm489_vm1, %v2234_v53 }
 0x319   : > { %v628_v54 = vpop.xlane.xlu0 %627 }
 0x31a   : > { %1777 = vrcp.f32 %v628_v54 }
 0x320   : > { %v1778_v56 = vpop.eup %1777 }
 0x321   : > { %v2238_v58 = vmul.f32 %v1778_v56, %v1770_v38 }
 0x323   : > { %v631_v55 = vpop.xlane.xlu2 %630 }
 0x324   : > { %1779 = vrcp.f32 %v631_v55 }
 0x32a   : > { %v1780_v60 = vpop.eup %1779 }
 0x32b   : > { %v625_v57 = vpop.xlane.xlu2 %624  ;;  %v2242_v62 = vmul.f32 %v1780_v60, %v1772_v44 }
 0x32c   : > { %1781 = vrcp.f32 %v625_v57  ;;  %v710_v59 = vpop.permute.xlu0 %709 }
 0x32d   : > { %729 = vmatpush.msra.mxu2 %v710_v59 }
 0x32e   : > { %1611 = vmatmul.msk.f32.vlgmr.msra.gmra.mxu2 %vm489_vm1, %v2238_v58 }
 0x32f   : > { %797 = vmatpush.msrb.mxu2 %v777_v6 }
 0x331   : > { %798 = vmatpush.msrb.mxu2 %v776_v7 }
 0x332   : > { %v1782_v61 = vpop.eup %1781 }
 0x333   : > { %v735_v63 = vpop.permute.xlu2 %734  ;;  %v2244_v0 = vmul.f32 %v1782_v61, %v1774_v46  ;;  %799 = vmatpush.msrb.mxu2 %v775_v8 }
 0x334   : > { %754 = vmatpush.msra.mxu1 %v735_v63 }
 0x335   : > { %1610 = vmatmul.msk.f32.vlgmr.msrb.gmra.mxu3 %vm489_vm1, %v2244_v0  ;;  %1612 = vmatmul.msk.f32.vlgmr.msra.gmra.mxu1 %vm489_vm1, %v2242_v62 }
 0x336   : > { %800 = vmatpush.msrb.mxu2 %v774_v9  ;;  %877 = vmatpush.msrb.mxu1 %v864_v25 }
 0x338   : > { %878 = vmatpush.msrb.mxu1 %v863_v26 }
 0x357   : > { %v681_v1 = vpop.f32.mrf.mxu2 }
 0x3b1   : > { %v731_v2 = vpop.f32.mrf.mxu2 }
 0x3b2   : > { %764 = vrot.lane.b32.xlu0 %v731_v2, %s2546_s28  ;;  %v756_v5 = vpop.f32.mrf.mxu1 }
 0x3b8   : > { %v706_v3 = vpop.f32.mrf.mxu3 }
 0x3b9   : > { %760 = vrot.lane.b32.xlu1 %v706_v3, %s2548_s26 }
 0x3c1   : > { %768 = vrot.lane.b32.xlu1 %v756_v5, %s2550_s13  ;;  %s2415_s13 = scalar_lea.vmem [#allocation9], %s1599_s5 }
 0x3c2   : > { %s1459_s23 = sshll.u32 %s2415_s13, 4  ;;  %s1460_s23 = int_to_ptr.vmem [resolvable:$true] %s1459_s23 }
 0x424   : > { %v765_v12 = vpop.permute.xlu0 %764 }
 0x42b   : > { %v761_v10 = vpop.permute.xlu1 %760 }
 0x42c   : > { %v771_v11 = vsel %vm489_vm1, %v681_v1, %v761_v10 }
 0x42d   : > { %v772_v13 = vsel %vm653_vm2, %v771_v11, %v765_v12 }
 0x433   : > { %v769_v14 = vpop.permute.xlu1 %768 }
 0x434   : > { %v773_v15 = vsel %vm655_vm3, %v772_v13, %v769_v14 }
 0x435   : > { %1613 = vmatmul.msk.f32.vlgmr.msrb.gmra.mxu2 %vm456_vm0, %v773_v15 }
 0x4b8   : > { %v802_v20 = vpop.f32.mrf.mxu2 }
 0x4b9   : > { %v803_v21 = vadd.f32 %v1762_v19, %v802_v20 }
 0x4bb   : > { %v805_v22 = vadd.f32 %v803_v21, %v2196_v4  ;;  %v862_v4 = vld [vmem:[%s2537_s7 + $0x28] sm:$0xff] }
 0x4bc   : > { %879 = vmatpush.msrb.mxu1 %v862_v4 }
 0x4bd   : > { %824 = vmatpush.msra.mxu3 %v805_v22 }
 0x4be   : > { %1614 = vmatmul.msk.f32.vlgmr.msra.gmra.mxu3 %vm489_vm1, %v2279_v23  ;;  %880 = vmatpush.msrb.mxu1 %v861_v27 }
 0x4bf   : > { %935 = vmatpush.msrb.mxu3 %v1621_v35 }
 0x4c0   : > { %881 = vmatpush.msrb.mxu1 %v860_v28 }
 0x4c1   : > { %936 = vmatpush.msrb.mxu3 %v1620_v36 }
 0x4c2   : > { %882 = vmatpush.msrb.mxu1 %v859_v29 }
 0x4c3   : > { %937 = vmatpush.msrb.mxu3 %v1619_v37 }
 0x4c4   : > { %883 = vmatpush.msrb.mxu1 %v858_v31 }
 0x4c5   : > { %938 = vmatpush.msrb.mxu3 %v1618_v40 }
 0x4c6   : > { %884 = vmatpush.msrb.mxu1 %v857_v32 }
 0x541   : > { %v826_v30 = vpop.f32.mrf.mxu3 }
 0x542   : > { %1615 = vmatmul.msk.f32.vlgmr.msrb.gmra.mxu0 %vm456_vm0, %v826_v30 }
 0x5bf   : > { %v853_v33 = vpop.f32.mrf.mxu0 }
 0x5c0   : > { %v856_v34 = vmax.f32 %v853_v33, 0.0 }
 0x5c2   : > { %1616 = vmatmul.msk.f32.vlgmr.msrb.gmra.mxu1 %vm865_vm4, %v856_v34 }
 0x63f   : > { %v886_v38 = vpop.f32.mrf.mxu1 }
 0x640   : > { %v889_v39 = vadd.f32 %v886_v38, %v826_v30 }
 0x642   : > { %905 = vmatpush.msra.mxu2 %v889_v39 }
 0x643   : > { %1617 = vmatmul.msk.f32.vlgmr.msra.gmra.mxu2 %vm489_vm1, %v2279_v23 }
 0x6c6   : > { %v2326_v41 = vpop.f32.mrf.mxu2 }
 0x6c7   : > { %1623 = vmatmul.msk.f32.vlgmr.msrb.gmra.mxu3 %vm456_vm0, %v2326_v41 }
 0x74a   : > { %v940_v43 = vpop.f32.mrf.mxu3 }
 0x74b   : > { %v2333_v44 = vadd.f32 %v1763_v42, %v940_v43 }
 0x74d   : > { %948 = vrot.lane.b32.xlu1 %v2333_v44, %s2003_s25  ;;  %946 = vrot.lane.b32.xlu2 %v2333_v44, %s2006_s19  ;;  %s2568_s25 = smov 64   ;;  %s2571_s19 = smov 24  }
 0x74e   : > { %944 = vrot.lane.b32.xlu0 %v2333_v44, %s2004_s14  ;;  %s2569_s14 = smov 8  }
 0x755   : > { %950 = vrot.lane.b32.xlu1 %v2333_v44, %s2005_s1 }
 0x7a7   : > { %v2343_v45 = vpop.permute.xlu2 %946 }
 0x7a8   : > { %1002 = vrot.lane.b32.xlu2 %v2343_v45, %s2005_s1 }
 0x7bf   : > { %v949_v46 = vpop.permute.xlu1 %948 }
 0x7c0   : > { %v945_v47 = vpop.permute.xlu0 %944 }
 0x7c1   : > { %976 = vrot.lane.b32.xlu0 %v945_v47, %s2005_s1  ;;  %v1756_v26 = vpack.i.bf16 %v2343_v45, %v945_v47 }
 0x7c7   : > { %v951_v48 = vpop.permute.xlu1 %950 }
 0x7c8   : > { %1624 = vmatpush.xpose.msk.msra.mxu0 %vm489_vm1, %v951_v48  ;;  %v1639_v48 = vld [vmem:[%s2534_s4 + $0x30] sm:$0xff] }
 0x7c9   : > { %1028 = vrot.lane.b32.xlu0 %v949_v46, %s2005_s1  ;;  %s2570_s1 = smov 16  }
 0x7cb   : > { %1625 = vmatmul.msk.f32.vlgmr.msra.gmra.mxu0 %vm489_vm1, %v2333_v44 }
 0x802   : > { %v1003_v49 = vpop.permute.xlu2 %1002 }
 0x803   : > { %1628 = vmatpush.xpose.msk.msra.mxu3 %vm489_vm1, %v1003_v49 }
 0x806   : > { %1629 = vmatmul.msk.f32.vlgmr.msra.gmra.mxu3 %vm489_vm1, %v2343_v45 }
 0x833   : > { %v977_v50 = vpop.permute.xlu0 %976 }
 0x834   : > { %1626 = vmatpush.xpose.msk.msrb.mxu2 %vm489_vm1, %v977_v50 }
 0x837   : > { %1627 = vmatmul.msk.f32.vlgmr.msrb.gmra.mxu2 %vm489_vm1, %v945_v47  ;;  %v1640_v47 = vld [vmem:[%s2534_s4 + $0x38] sm:$0xff] }
 0x83b   : > { %v1029_v51 = vpop.permute.xlu0 %1028 }
 0x83c   : > { %1630 = vmatpush.xpose.msk.msrb.mxu0 %vm489_vm1, %v1029_v51 }
 0x83f   : > { %1631 = vmatmul.msk.f32.vlgmr.msrb.gmra.mxu0 %vm489_vm1, %v949_v46 }
 0x848   : > { %v973_v56 = vpop.f32.mrf.mxu0 }
 0x849   : > { %v1054_v2 = vmul.f32 0.35355338, %v973_v56 }
 0x84b   : > { %v1058_v3 = vsel %vm489_vm1, %v1054_v2, -inf }
 0x889   : > { %v1025_v52 = vpop.f32.mrf.mxu3 }
 0x88a   : > { %v1056_v54 = vmul.f32 0.35355338, %v1025_v52 }
 0x88c   : > { %v1064_v55 = vsel %vm489_vm1, %v1056_v54, -inf }
 0x88d   : > { %1065 = vmax.xlane.f32.xlu1 %v1064_v55 }
 0x8ba   : > { %v999_v57 = vpop.f32.mrf.mxu2 }
 0x8bb   : > { %v1055_v59 = vmul.f32 0.35355338, %v999_v57 }
 0x8bc   : > { %v1051_v60 = vpop.f32.mrf.mxu0 }
 0x8bd   : > { %v1057_v61 = vmul.f32 0.35355338, %v1051_v60  ;;  %v1061_v63 = vsel %vm489_vm1, %v1055_v59, -inf }
 0x8be   : > { %1062 = vmax.xlane.f32.xlu2 %v1061_v63 }
 0x8bf   : > { %v1067_v1 = vsel %vm489_vm1, %v1057_v61, -inf }
 0x8c0   : > { %1068 = vmax.xlane.f32.xlu0 %v1067_v1 }
 0x8c6   : > { %1059 = vmax.xlane.f32.xlu2 %v1058_v3 }
 0x900   : > { %v1066_v5 = vpop.xlane.xlu1 %1065 }
 0x901   : > { %v1072_v6 = vsub.f32 %v1056_v54, %v1066_v5 }
 0x903   : > { %v1078_v7 = vmul.f32 1.442695, %v1072_v6  ;;  %v1646_v6 = vld [vmem:[%s2536_s6 + $0x38] sm:$0xff] }
 0x905   : > { %1783 = vpow2.f32 %v1078_v7  ;;  %v1645_v7 = vld [vmem:[%s2536_s6 + $0x30] sm:$0xff] }
 0x90b   : > { %v1784_v8 = vpop.eup %1783 }
 0x90c   : > { %v1088_v9 = vsel %vm489_vm1, %v1784_v8, 0.0 }
 0x90d   : > { %1089 = vadd.xlane.f32.xlu0 %v1088_v9 }
 0x921   : > { %1195 = vrot.lane.b32.xlu0 %v949_v46, %s2568_s25 }
 0x931   : > { %v1063_v10 = vpop.xlane.xlu2 %1062 }
 0x932   : > { %v1071_v11 = vsub.f32 %v1055_v59, %v1063_v10 }
 0x933   : > { %v1069_v12 = vpop.xlane.xlu0 %1068 }
 0x934   : > { %v1076_v13 = vmul.f32 1.442695, %v1071_v11  ;;  %v1073_v14 = vsub.f32 %v1057_v61, %v1069_v12  ;;  %v1643_v12 = vld [vmem:[%s2536_s6 + $0x20] sm:$0xff] }
 0x936   : > { %1785 = vpow2.f32 %v1076_v13  ;;  %v1080_v15 = vmul.f32 1.442695, %v1073_v14  ;;  %v1655_v13 = vld [vmem:[%s2537_s7 + $0x78] sm:$0xff]  ;;  %v1654_v14 = vld [vmem:[%s2537_s7 + $0x70] sm:$0xff] }
 0x938   : > { %1787 = vpow2.f32 %v1080_v15  ;;  %v1652_v15 = vld [vmem:[%s2537_s7 + $0x60] sm:$0xff] }
 0x939   : > { %v1060_v16 = vpop.xlane.xlu2 %1059 }
 0x93a   : > { %v1070_v17 = vsub.f32 %v1054_v2, %v1060_v16  ;;  %v1651_v16 = vld [vmem:[%s2537_s7 + $0x58] sm:$0xff] }
 0x93c   : > { %v1786_v18 = vpop.eup %1785  ;;  %v1074_v19 = vmul.f32 1.442695, %v1070_v17  ;;  %v1650_v17 = vld [vmem:[%s2537_s7 + $0x50] sm:$0xff] }
 0x93d   : > { %v1085_v20 = vsel %vm489_vm1, %v1786_v18, 0.0 }
 0x93e   : > { %v1788_v21 = vpop.eup %1787  ;;  %1789 = vpow2.f32 %v1074_v19  ;;  %1086 = vadd.xlane.f32.xlu1 %v1085_v20  ;;  %v1649_v19 = vld [vmem:[%s2537_s7 + $0x48] sm:$0xff]  ;;  %v1648_v20 = vld [vmem:[%s2537_s7 + $0x40] sm:$0xff] }
 0x93f   : > { %v1091_v22 = vsel %vm489_vm1, %v1788_v21, 0.0 }
 0x940   : > { %1092 = vadd.xlane.f32.xlu2 %v1091_v22 }
 0x944   : > { %v1790_v24 = vpop.eup %1789 }
 0x945   : > { %v1082_v25 = vsel %vm489_vm1, %v1790_v24, 0.0 }
 0x948   : > { %1083 = vadd.xlane.f32.xlu2 %v1082_v25 }
 0x957   : > { %1757 = vrot.lane.b32.xlu1 %v1756_v26, %s2568_s25 }
 0x960   : > { %1119 = vrot.lane.b32.xlu2 %v2333_v44, %s2568_s25 }
 0x980   : > { %v1090_v4 = vpop.xlane.xlu0 %1089 }
 0x993   : > { %v1196_v27 = vpop.permute.xlu0 %1195 }
 0x994   : > { %1215 = vmatpush.msra.mxu0 %v1196_v27  ;;  %v2011_v27 = vmov 32.0  }
 0x996   : > { %1338 = vmatpush.msrb.mxu0 %v1655_v13 }
 0x998   : > { %1339 = vmatpush.msrb.mxu0 %v1654_v14 }
 0x9b1   : > { %v1087_v32 = vpop.xlane.xlu1 %1086 }
 0x9b3   : > { %v1093_v28 = vpop.xlane.xlu2 %1092 }
 0x9b4   : > { %1791 = vrcp.f32 %v1093_v28 }
 0x9ba   : > { %v1792_v29 = vpop.eup %1791 }
 0x9bb   : > { %v2372_v30 = vmul.f32 %v1792_v29, %v1788_v21  ;;  %v1084_v31 = vpop.xlane.xlu2 %1083 }
 0x9bc   : > { %1793 = vrcp.f32 %v1084_v31 }
 0x9bd   : > { %1636 = vmatmul.msk.f32.vlgmr.msra.gmra.mxu0 %vm489_vm1, %v2372_v30  ;;  %1795 = vrcp.f32 %v1090_v4 }
 0x9be   : > { %1797 = vrcp.f32 %v1087_v32 }
 0x9bf   : > { %1799 = vrcp.f32 %v2011_v27 }
 0x9c2   : > { %v1794_v33 = vpop.eup %1793 }
 0x9c3   : > { %v1098_v34 = vmul.f32 %v1794_v33, %v1790_v24  ;;  %v1120_v35 = vpop.permute.xlu2 %1119  ;;  %v1796_v36 = vpop.eup %1795 }
 0x9c4   : > { %1140 = vmatpush.msra.mxu1 %v1120_v35  ;;  %v1798_v37 = vpop.eup %1797  ;;  %v1100_v42 = vmul.f32 %v1796_v36, %v1784_v8  ;;  %v1764_v8 = vld [vmem:[#allocation7 + $0x1] ss:$0 sm:$0xff] }
 0x9c5   : > { %1633 = vmatmul.msk.f32.vlgmr.msra.gmra.mxu1 %vm489_vm1, %v1098_v34  ;;  %v1099_v43 = vmul.f32 %v1798_v37, %v1786_v18  ;;  %v1800_v28 = vpop.eup %1799 }
 0x9c6   : > { %1260 = vmatpush.msrb.mxu1 %v1640_v47  ;;  %v1375_v29 = vmul.f32 32.0, %v1800_v28  ;;  %vm1379_vm5 = vweird.f32 %v1800_v28 }
 0x9c8   : > { %1261 = vmatpush.msrb.mxu1 %v1639_v48  ;;  %v1376_v31 = vsub.f32 1.0, %v1375_v29 }
 0x9c9   : > { %v1758_v38 = vpop.permute.xlu1 %1757 }
 0x9ca   : > { %v1760_v39 = vunpack.i.h.bf16 %v1758_v38  ;;  %v1759_v40 = vunpack.i.l.bf16 %v1758_v38  ;;  %v1377_v32 = vmul.f32 %v1800_v28, %v1376_v31 }
 0x9cc   : > { %1165 = vmatpush.msra.mxu2 %v1759_v40  ;;  %1190 = vmatpush.msrb.mxu3 %v1760_v39  ;;  %v1378_v33 = vadd.f32 %v1800_v28, %v1377_v32 }
 0x9cd   : > { %1634 = vmatmul.msk.f32.vlgmr.msra.gmra.mxu2 %vm489_vm1, %v1099_v43  ;;  %1635 = vmatmul.msk.f32.vlgmr.msrb.gmra.mxu3 %vm489_vm1, %v1100_v42 }
 0x9ce   : > { %1309 = vmatpush.msra.mxu3 %v1646_v6 }
 0x9d0   : > { %1310 = vmatpush.msra.mxu3 %v1645_v7 }
 0xa3a   : > { %v1217_v46 = vpop.f32.mrf.mxu0 }
 0xa42   : > { %v1142_v49 = vpop.f32.mrf.mxu1 }
 0xa50   : > { %v1167_v44 = vpop.f32.mrf.mxu2  ;;  %v1192_v45 = vpop.f32.mrf.mxu3 }
 0xa51   : > { %1221 = vrot.lane.b32.xlu0 %v1167_v44, %s2569_s14  ;;  %1225 = vrot.lane.b32.xlu1 %v1192_v45, %s2570_s1 }
 0xa59   : > { %1229 = vrot.lane.b32.xlu0 %v1217_v46, %s2571_s19 }
 0xa61   : > { %641 = vrot.lane.b32.xlu0 %v2244_v0, %s2569_s14  ;;  %v1638_v0 = vld [vmem:[%s2534_s4 + $0x28] sm:$0xff] }
 0xa62   : > { %1262 = vmatpush.msrb.mxu1 %v1638_v0 }
 0xa69   : > { %1103 = vrot.lane.b32.xlu0 %v1099_v43, %s2569_s14 }
 0xa71   : > { %645 = vrot.lane.b32.xlu0 %v2238_v58, %s2570_s1  ;;  %v1637_v58 = vld [vmem:[%s2534_s4 + $0x20] sm:$0xff] }
 0xa72   : > { %1263 = vmatpush.msrb.mxu1 %v1637_v58 }
 0xa79   : > { %1107 = vrot.lane.b32.xlu0 %v1100_v42, %s2570_s1  ;;  %s1915_s1 = scalar_lea.hbm %s2541_s11, 32 }
 0xa81   : > { %649 = vrot.lane.b32.xlu0 %v2242_v62, %s2571_s19 }
 0xac3   : > { %v1222_v62 = vpop.permute.xlu0 %1221  ;;  %v1226_v50 = vpop.permute.xlu1 %1225 }
 0xac4   : > { %v1232_v51 = vsel %vm489_vm1, %v1142_v49, %v1222_v62 }
 0xac5   : > { %v1233_v52 = vsel %vm653_vm2, %v1232_v51, %v1226_v50 }
 0xacb   : > { %v1230_v54 = vpop.permute.xlu0 %1229 }
 0xacc   : > { %v1234_v55 = vsel %vm655_vm3, %v1233_v52, %v1230_v54 }
 0xacd   : > { %1641 = vmatmul.msk.f32.vlgmr.msrb.gmra.mxu1 %vm456_vm0, %v1234_v55 }
 0xad3   : > { %v642_v56 = vpop.permute.xlu0 %641 }
 0xad4   : > { %v652_v1 = vsel %vm489_vm1, %v2234_v53, %v642_v56  ;;  %v1644_v53 = vld [vmem:[%s2536_s6 + $0x28] sm:$0xff] }
 0xad5   : > { %1311 = vmatpush.msra.mxu3 %v1644_v53 }
 0xad7   : > { %1312 = vmatpush.msra.mxu3 %v1643_v12 }
 0xadb   : > { %v1104_v57 = vpop.permute.xlu0 %1103 }
 0xadc   : > { %v1114_v60 = vsel %vm489_vm1, %v1098_v34, %v1104_v57  ;;  %v1380_v34 = vsel %vm1379_vm5, %v1800_v28, %v1378_v33 }
 0xae3   : > { %v646_v59 = vpop.permute.xlu0 %645 }
 0xae4   : > { %v654_v2 = vsel %vm653_vm2, %v652_v1, %v646_v59 }
 0xaeb   : > { %v1108_v61 = vpop.permute.xlu0 %1107 }
 0xaec   : > { %v2408_v63 = vsel %vm653_vm2, %v1114_v60, %v1108_v61 }
 0xaf3   : > { %v650_v3 = vpop.permute.xlu0 %649 }
 0xaf4   : > { %v656_v5 = vsel %vm655_vm3, %v654_v2, %v650_v3 }
 0xaf5   : > { %657 = vst.msk [vmem:[%s2415_s13] sm:$0xff] %vm456_vm0, %v656_v5 }
 0xb4a   : > { %v1265_v9 = vpop.f32.mrf.mxu1 }
 0xb4b   : > { %v1266_v10 = vadd.f32 %v1764_v8, %v1265_v9 }
 0xb4d   : > { %v1268_v11 = vadd.f32 %v1266_v10, %v2326_v41  ;;  %v1653_v41 = vld [vmem:[%s2537_s7 + $0x68] sm:$0xff] }
 0xb4e   : > { %1340 = vmatpush.msrb.mxu0 %v1653_v41 }
 0xb4f   : > { %1284 = vmatpush.msrb.mxu2 %v1268_v11 }
 0xb50   : > { %1642 = vmatmul.msk.f32.vlgmr.msrb.gmra.mxu2 %vm489_vm1, %v2279_v23  ;;  %1341 = vmatpush.msrb.mxu0 %v1652_v15 }
 0xb52   : > { %1342 = vmatpush.msrb.mxu0 %v1651_v16 }
 0xb54   : > { %1343 = vmatpush.msrb.mxu0 %v1650_v17 }
 0xb56   : > { %1344 = vmatpush.msrb.mxu0 %v1649_v19 }
 0xb58   : > { %1345 = vmatpush.msrb.mxu0 %v1648_v20 }
 0xbd3   : > { %v1286_v18 = vpop.f32.mrf.mxu2 }
 0xbd4   : > { %1647 = vmatmul.msk.f32.vlgmr.msra.gmra.mxu3 %vm456_vm0, %v1286_v18 }
 0xc57   : > { %v1314_v21 = vpop.f32.mrf.mxu3 }
 0xc58   : > { %v1317_v22 = vmax.f32 %v1314_v21, 0.0 }
 0xc5a   : > { %1656 = vmatmul.msk.f32.vlgmr.msrb.gmra.mxu0 %vm865_vm4, %v1317_v22 }
 0xcd7   : > { %v1347_v24 = vpop.f32.mrf.mxu0 }
 0xcd8   : > { %v1350_v25 = vadd.f32 %v1347_v24, %v1286_v18 }
 0xcda   : > { %1366 = vmatpush.msra.mxu1 %v1350_v25 }
 0xcdb   : > { %1657 = vmatmul.msk.f32.vlgmr.msra.gmra.mxu1 %vm489_vm1, %v2279_v23 }
 0xd58   : > { %v1368_v26 = vpop.f32.mrf.mxu1 }
 0xd59   : > { %v1371_v4 = vsel %vm456_vm0, %v1368_v26, 0.0 }
 0xd5a   : > { %1372 = vadd.xlane.f32.xlu1 %v1371_v4 }
 0xd73   : > { %1111 = vrot.lane.b32.xlu1 %v2372_v30, %s2571_s19  ;;  %s1665_s19 = sshll.u32 %s2095_s21, 4 }
 0xd74   : > { %s1458_s22 = scalar_lea.hbm %s2541_s11, %s1665_s19 }
 0xd75   : > { %s1461_s29 = sshll.u32 %s1458_s22, 4  ;;  %s1462_s29 = int_to_ptr.hbm [resolvable:$true] %s1461_s29 }
 0xd76   : > { %s1909_s28 = sshra.s32 %s1462_s29, 4  ;;  %s1910_s28 = int_to_ptr.hbm [resolvable:$true] %s1909_s28 }
 0xd77   : > { %s1911_s26 = scalar_lea.hbm %s1910_s28, 16  ;;  %p1916_p9 = scmp.lt.s32.totalorder %s1910_s28, %s2541_s11 }
 0xd78   : > { %p1912_p1 = scmp.ne.s32.totalorder %s1910_s28, %s1911_s26  ;;  %p1917_p10 = scmp.lt.s32.totalorder %s1915_s1, %s1911_s26 }
 0xd7a   : > { %p1913_p4 = pnand %p1912_p1, %p2143_p5  ;;  %p1918_p2 = por %p1917_p10, %p1916_p9 }
 0xd7c   : > { %p1914_p8 = pneg %p1913_p4 }
 0xd7e   : > { %p1919_p11 = pnand %p1918_p2, %p1914_p8 }
 0xdcd   : > { %v1373_v23 = vpop.xlane.xlu1 %1372 }
 0xdce   : > { %v1381_v35 = vmul.f32 %v1380_v34, %v1373_v23 }
 0xdd0   : > { %v1382_v36 = vsub.f32 %v1368_v26, %v1381_v35 }
 0xdd2   : > { %v1383_v37 = vmul.f32 %v1382_v36, %v1382_v36 }
 0xdd4   : > { %v1384_v38 = vsel %vm456_vm0, %v1383_v37, 0.0 }
 0xdd5   : > { %1385 = vadd.xlane.f32.xlu2 %v1384_v38 }
 0xde5   : > { %v1112_v30 = vpop.permute.xlu1 %1111 }
 0xde6   : > { %v1116_v39 = vsel %vm655_vm3, %v2408_v63, %v1112_v30 }
 0xde7   : > { %1632 = vst.msk [vmem:[%s2415_s13 + $0x8] sm:$0xff] %vm456_vm0, %v1116_v39 }
 0xde8   : > { %1922 = shalt.err (!%p1919_p11)
}
 0xde9   : > { %s2012_s19 = smov 128   ;;  %v2013_v47 = vmov 8.0   ;;  %v1765_v49 = vld [vmem:[%s2538_s8] ss:$0 sm:$0xff]  ;;  %s1660_s16 = sshll.u32 %s2095_s21, 3 }
 0xdea   : > { %1677 = dma.vmem_to_hbm [thread:$0]  (%p2143_p5), %s1460_s23, 256, %s1462_s29, %s1433_s12, %s2012_s19, %s2012_s19, %s2569_s14  }
 0xdeb   : > { %v1766_v51 = vld [vmem:[%s2539_s9] ss:$0 sm:$0xff]  ;;  %s1443_s12 = scalar_lea.hbm %s2540_s10, %s1660_s16  ;;  %s2572_s28 = sshll.u32 %s2170_s27, 3 }
 0xdec   : > { %s438_s26 = scalar_lea.vmem [#allocation8], %s2572_s28  ;;  %s1447_s25 = sshll.u32 %s1443_s12, 4  ;;  %s1448_s25 = int_to_ptr.hbm [resolvable:$true] %s1447_s25 }
 0xded   : > { %s1445_s5 = sshll.u32 %s438_s26, 4  ;;  %s1428_s21 = scalar_lea.sflag [#allocation4], %s2170_s27  ;;  %s1446_s5 = int_to_ptr.vmem [resolvable:$true] %s1445_s5 }
 0xdee   : > { %s1937_s1 = sshra.s32 %s1448_s25, 4  ;;  %s1943_s30 = scalar_lea.hbm %s2540_s10, 16  ;;  %s1938_s1 = int_to_ptr.hbm [resolvable:$true] %s1937_s1 }
 0xdef   : > { %s1939_s13 = scalar_lea.hbm %s1938_s1, 8  ;;  %p1944_p3 = scmp.lt.s32.totalorder %s1938_s1, %s2540_s10 }
 0xdf0   : > { %p1940_p12 = scmp.ne.s32.totalorder %s1938_s1, %s1939_s13  ;;  %p1945_p7 = scmp.lt.s32.totalorder %s1943_s30, %s1939_s13 }
 0xdf2   : > { %p1941_p13 = pnand %p1940_p12, %p2143_p5  ;;  %p1946_p1 = por %p1945_p7, %p1944_p3 }
 0xdf4   : > { %p1942_p0 = pneg %p1941_p13 }
 0xdf6   : > { %p1947_p4 = pnand %p1946_p1, %p1942_p0 }
 0xe48   : > { %v1386_v40 = vpop.xlane.xlu2 %1385 }
 0xe49   : > { %v1387_v42 = vmul.f32 %v1386_v40, %v1380_v34 }
 0xe4b   : > { %v1388_v43 = vadd.f32 1e-05, %v1387_v42 }
 0xe4d   : > { %1801 = vrsqrt.f32 %v1388_v43  ;;  %vm1395_vm7 = vweird.f32 %v1388_v43 }
 0xe4e   : > { %1803 = vrcp.f32 %v2013_v47 }
 0xe53   : > { %v1802_v44 = vpop.eup %1801 }
 0xe54   : > { %v1390_v45 = vmul.f32 %v1802_v44, %v1388_v43  ;;  %vm1396_vm6 = vweird.f32 %v1802_v44  ;;  %v1804_v58 = vpop.eup %1803 }
 0xe55   : > { %vm1397_vm8 = vmor %vm1395_vm7, %vm1396_vm6  ;;  %v1418_v54 = vmul.f32 8.0, %v1804_v58  ;;  %vm1422_vm9 = vweird.f32 %v1804_v58 }
 0xe56   : > { %v1391_v46 = vmul.f32 %v1802_v44, %v1390_v45 }
 0xe57   : > { %v1419_v57 = vsub.f32 1.0, %v1418_v54 }
 0xe58   : > { %v1392_v48 = vmul.f32 0.5, %v1391_v46 }
 0xe59   : > { %v1420_v61 = vmul.f32 %v1804_v58, %v1419_v57 }
 0xe5a   : > { %v1393_v0 = vsub.f32 1.5, %v1392_v48 }
 0xe5b   : > { %v1421_v2 = vadd.f32 %v1804_v58, %v1420_v61 }
 0xe5c   : > { %v1394_v62 = vmul.f32 %v1802_v44, %v1393_v0 }
 0xe5d   : > { %v1423_v6 = vsel %vm1422_vm9, %v1804_v58, %v1421_v2 }
 0xe5e   : > { %v1398_v50 = vsel %vm1397_vm8, %v1802_v44, %v1394_v62 }
 0xe5f   : > { %v1399_v52 = vmul.f32 %v1398_v50, %v1382_v36 }
 0xe61   : > { %v1404_v55 = vmul.f32 %v1765_v49, %v1399_v52 }
 0xe63   : > { %v1409_v56 = vadd.f32 %v1766_v51, %v1404_v55 }
 0xe65   : > { %v1410_v59 = vsel %vm456_vm0, %v1409_v56, 0.0 }
 0xe66   : > { %v1411_v60 = vrot.slane %v1410_v59, 4 }
 0xe68   : > { %v1412_v63 = vadd.f32 %v1411_v60, %v1410_v59 }
 0xe6a   : > { %v1413_v1 = vrot.slane %v1412_v63, 2 }
 0xe6c   : > { %v1414_v3 = vadd.f32 %v1413_v1, %v1412_v63 }
 0xe6e   : > { %v1415_v5 = vrot.slane %v1414_v3, 1 }
 0xe70   : > { %v1416_v7 = vadd.f32 %v1415_v5, %v1414_v3 }
 0xe72   : > { %v1424_v53 = vmul.f32 %v1423_v6, %v1416_v7 }
 0xe74   : > { %v1425_v8 = vsub.f32 %v1409_v56, %v1424_v53 }
 0xe76   : > { %1426 = vst.msk [vmem:[%s438_s26] sm:$0xff] %vm456_vm0, %v1425_v8 }
 0xe77   : > { %1950 = shalt.err (!%p1947_p4)
}
 0xe78   : > { %1676 = dma.vmem_to_hbm [thread:$0]  (%p2143_p5), %s1446_s5, 128, %s1448_s25, %s1428_s21  }
 0xe79 PF: > { %s1476_s27 = sand.u32 1, %s1985_s17   ;;  %p2573_p8 = scmp.ge.s32.totalorder %s1997_s20, 2 }
 0xe7a   : > { %s1477_s16 = scalar_lea.sflag [#allocation4], %s1476_s27 }
 0xe7b   : > { %p1692_p9 = pnand %p2573_p8, %p2109_p6 }
 0xe7d   : > { %p1693_p10 = pneg %p1692_p9 }
 0xe7f   : > { %1976 = dma.done.wait (%p1693_p10), %s1477_s16, 128  }
 0xe80   : > { %1978 = vsyncadd (%p1693_p10), %s1477_s16, 4294967168  ;;  %s1487_s22 = scalar_lea.sflag [#allocation10], %s1476_s27 }
 0xe81   : > { %1980 = dma.done.wait (%p1693_p10), %s1487_s22, 256  }
 0xe82   : > { %1982 = vsyncadd (%p1693_p10), %s1487_s22, 4294967040  ;;  %s2574_s20 = sld [smem:[#allocation16_spill]]  ;;  %s2577_s17 = smov %s1989_s18 }
 0xe83   : > { %s2575_s29 = sld [smem:[#allocation15_spill]] }
 0xe84   : > { %s2576_s19 = sld [smem:[#allocation17_spill]] }
 0xe88   : > { %p29_p5 = scmp.ge.s32.totalorder %s2574_s20, 4  }
 0xe89   : > { %s2578_s18 = smov %s2575_s29 }
 0xe8a   :  { %31 = sbr.rel (!%p29_p5) target bundleno = 12 (0xc), region = 137 }
 0xe8f   :  { %1493 = vsyncpa [#allocation3], 1 }
 0xe90   :  { %1495 = vsyncpa [#allocation3 + $0x1], 1 }
 0xe91   :  { %1496 = vsyncpa [#allocation6], 1 }
 0xe92   :  { %1497 = vsyncpa [#allocation4], 1 }
 0xe93   :  { %1499 = vsyncpa [#allocation4 + $0x1], 1 }
 0xe94   :  { %1500 = vsyncpa [#allocation10], 1 }
 0xe95   :  { %1502 = vsyncpa [#allocation10 + $0x1], 1 }

</bundles_post_ra>
